<compile_context>
chip_gen: v7x
topology: tpu7x:2x2x1
jax: 0.10.0
libtpu: 0.0.40
codegen_flags: <defaults>
</compile_context>

<pallas_src>
import functools

import jax
import jax.numpy as jnp
from jax.experimental import pallas as pl
from jax.experimental.pallas import tpu as pltpu


def _round_up(x, m):
    return (x + m - 1) // m * m


# --------------------------------------------------------------------------
# Recurrent kernel: processes T_CHUNK timesteps per grid step, carries h/c in
# VMEM scratch, emits only the layer-2 hidden state per timestep.
# --------------------------------------------------------------------------
def _lstm_recurrent_kernel(xg1_ref, w1h_ref, w2s_ref, b2_ref, h0_ref, c0_ref,
                           h2out_ref, hn_ref, cn_ref,
                           h1_sc, c1_sc, h2_sc, c2_sc,
                           *, t_chunk, hid_dim, seq_len, masked):
    tc = pl.program_id(0)

    # Initialize carried state from (h_0, c_0) on the first chunk.
    @pl.when(tc == 0)
    def _():
        h1_sc[...] = h0_ref[0]
        c1_sc[...] = c0_ref[0]
        h2_sc[...] = h0_ref[1]
        c2_sc[...] = c0_ref[1]

    H = hid_dim
    h1 = h1_sc[...]
    c1 = c1_sc[...]
    h2 = h2_sc[...]
    c2 = c2_sc[...]

    # Loop-invariant operands hoisted out of the unrolled time loop.
    w1h = w1h_ref[...]          # (H, 4H)
    w2s = w2s_ref[...]          # (2H, 4H) = stack([W2x^T, W2h^T])
    b2 = b2_ref[...]            # (B, 4H), pre-broadcast in the wrapper

    def gates_to_hc(gates, c):
        # PyTorch gate order [i, f, g, o]; H is a multiple of 128 -> lane-aligned.
        i = jax.nn.sigmoid(gates[:, 0 * H:1 * H])
        f = jax.nn.sigmoid(gates[:, 1 * H:2 * H])
        g = jnp.tanh(gates[:, 2 * H:3 * H])
        o = jax.nn.sigmoid(gates[:, 3 * H:4 * H])
        c_new = f * c + i * g
        h_new = o * jnp.tanh(c_new)
        return h_new, c_new

    for tt in range(t_chunk):   # static unroll inside the chunk
        # Layer 1: input-to-gate contribution (x @ W1x + b1) was precomputed
        # outside the recurrence; only the recurrent matmul remains.
        g1 = xg1_ref[tt] + jnp.dot(h1, w1h, preferred_element_type=jnp.float32)
        h1n, c1n = gates_to_hc(g1, c1)

        # Layer 2: single fused matmul over concat([h1, h2_prev]).
        g2 = jnp.dot(jnp.concatenate([h1n, h2], axis=1), w2s,
                     preferred_element_type=jnp.float32) + b2
        h2n, c2n = gates_to_hc(g2, c2)

        if masked:
            # Only emitted when seq_len % t_chunk != 0: freeze state on padded
            # tail timesteps (arithmetic blend -> plain VPU ops).
            m = ((tc * t_chunk + tt) < seq_len).astype(jnp.float32)
            h1 = m * h1n + (1.0 - m) * h1
            c1 = m * c1n + (1.0 - m) * c1
            h2 = m * h2n + (1.0 - m) * h2
            c2 = m * c2n + (1.0 - m) * c2
        else:
            h1, c1, h2, c2 = h1n, c1n, h2n, c2n

        h2out_ref[tt] = h2

    # Carry state to the next chunk.
    h1_sc[...] = h1
    c1_sc[...] = c1
    h2_sc[...] = h2
    c2_sc[...] = c2

    # (h_n, c_n) written only once, on the final chunk.
    @pl.when(tc == pl.num_programs(0) - 1)
    def _():
        hn_ref[0] = h1
        hn_ref[1] = h2
        cn_ref[0] = c1
        cn_ref[1] = c2


# --------------------------------------------------------------------------
# Parallel vocab projection: (M, H) x (H, V) + b, tiled over rows.
# --------------------------------------------------------------------------
def _proj_kernel(h_ref, w_ref, b_ref, o_ref):
    o_ref[...] = (jnp.dot(h_ref[...], w_ref[...],
                          preferred_element_type=jnp.float32)
                  + b_ref[...])


def poetry_forward(tokens, params, hidden=None, *, t_chunk=4):
    """tokens: (S, B) int32. Returns (logits (S*B, V), (h_n, c_n))."""
    S, B = tokens.shape
    E = params["emb"].shape[1]
    H = params["w1h_t"].shape[0]
    V = params["wo_t"].shape[1]

    # Lane/sublane-aligned padded sizes.
    Hp = _round_up(H, 128)
    Bp = _round_up(B, 8)
    Vp = _round_up(V, 128)
    t_chunk = max(1, min(t_chunk, S))
    Sp = _round_up(S, t_chunk)
    n_chunks = Sp // t_chunk
    masked = (Sp != S)

    if hidden is None:
        h0 = jnp.zeros((2, B, H), jnp.float32)
        c0 = jnp.zeros((2, B, H), jnp.float32)
    else:
        h0, c0 = hidden

    # ---- parameter re-layout: per-gate padding of H -> Hp keeps i/f/g/o
    #      slices whole-vreg aligned; zero padding keeps padded state exactly 0.
    def pad_gate_cols(w):                      # (K, 4H) -> (K, 4Hp)
        k = w.shape[0]
        return jnp.pad(w.reshape(k, 4, H),
                       ((0, 0), (0, 0), (0, Hp - H))).reshape(k, 4 * Hp)

    def pad_rows(w, kp):
        return jnp.pad(w, ((0, kp - w.shape[0]), (0, 0)))

    w1x_p = pad_gate_cols(params["w1x_t"])                     # (E, 4Hp)
    b1_p = pad_gate_cols(params["b1"])                         # (1, 4Hp)
    w1h_p = pad_rows(pad_gate_cols(params["w1h_t"]), Hp)       # (Hp, 4Hp)
    w2x_p = pad_rows(pad_gate_cols(params["w2x_t"]), Hp)       # (Hp, 4Hp)
    w2h_p = pad_rows(pad_gate_cols(params["w2h_t"]), Hp)       # (Hp, 4Hp)
    w2s = jnp.concatenate([w2x_p, w2h_p], axis=0)              # (2Hp, 4Hp)
    b2_p = jnp.broadcast_to(pad_gate_cols(params["b2"]), (Bp, 4 * Hp))
    wo_p = jnp.pad(params["wo_t"], ((0, Hp - H), (0, Vp - V))) # (Hp, Vp)
    bo_p = jnp.pad(params["bo"], ((0, 0), (0, Vp - V)))        # (1, Vp)

    # ---- XLA glue: embedding gather + layer-1 input gates for ALL timesteps
    #      as one large parallel matmul (no recurrent dependency).
    embeds = jnp.take(params["emb"], tokens, axis=0)           # (S, B, E)
    xg1 = (embeds.reshape(S * B, E) @ w1x_p + b1_p).reshape(S, B, 4 * Hp)
    xg1 = jnp.pad(xg1, ((0, Sp - S), (0, Bp - B), (0, 0)))     # (Sp, Bp, 4Hp)

    h0_p = jnp.pad(h0, ((0, 0), (0, Bp - B), (0, Hp - H)))
    c0_p = jnp.pad(c0, ((0, 0), (0, Bp - B), (0, Hp - H)))

    full = lambda shape: pl.BlockSpec(shape, lambda t: (0,) * len(shape))

    # ---- recurrent Pallas kernel (sequential over time chunks) ----
    kernel = functools.partial(_lstm_recurrent_kernel,
                               t_chunk=t_chunk, hid_dim=Hp,
                               seq_len=S, masked=masked)
    # TODO(synk): weights are loop-invariant; a single-buffered / ANY-space
    # residency plan would halve their VMEM footprint at large H, V (v7x).
    h2_all, h_n_p, c_n_p = pl.pallas_call(
        kernel,
        out_shape=(jax.ShapeDtypeStruct((Sp, Bp, Hp), jnp.float32),
                   jax.ShapeDtypeStruct((2, Bp, Hp), jnp.float32),
                   jax.ShapeDtypeStruct((2, Bp, Hp), jnp.float32)),
        grid_spec=pltpu.PrefetchScalarGridSpec(
            num_scalar_prefetch=0,
            grid=(n_chunks,),
            in_specs=[
                pl.BlockSpec((t_chunk, Bp, 4 * Hp), lambda t: (t, 0, 0)),  # xg1
                full((Hp, 4 * Hp)),     # layer-1 W_hh^T
                full((2 * Hp, 4 * Hp)), # layer-2 stacked [W_ih^T; W_hh^T]
                full((Bp, 4 * Hp)),     # layer-2 bias (pre-broadcast)
                full((2, Bp, Hp)),      # h_0
                full((2, Bp, Hp)),      # c_0
            ],
            out_specs=[
                pl.BlockSpec((t_chunk, Bp, Hp), lambda t: (t, 0, 0)),  # h2 per t
                full((2, Bp, Hp)),      # h_n
                full((2, Bp, Hp)),      # c_n
            ],
            scratch_shapes=[pltpu.VMEM((Bp, Hp), jnp.float32)] * 4,
        ),
        compiler_params=pltpu.CompilerParams(
            dimension_semantics=("arbitrary",),        # true recurrence
            vmem_limit_bytes=48 * 1024 * 1024),        # safe under v7x 64 MiB
    )(xg1, w1h_p, w2s, b2_p, h0_p, c0_p)

    # ---- parallel vocab projection over all timesteps at once ----
    h2_flat = h2_all[:S, :B, :].reshape(S * B, Hp)
    M = S * B
    TM = 256 if M > 256 else _round_up(M, 8)
    Mp = _round_up(M, TM)
    h2_flat = jnp.pad(h2_flat, ((0, Mp - M), (0, 0)))

    logits_p = pl.pallas_call(
        _proj_kernel,
        out_shape=jax.ShapeDtypeStruct((Mp, Vp), jnp.float32),
        grid_spec=pltpu.PrefetchScalarGridSpec(
            num_scalar_prefetch=0,
            grid=(Mp // TM,),
            in_specs=[
                pl.BlockSpec((TM, Hp), lambda m: (m, 0)),
                pl.BlockSpec((Hp, Vp), lambda m: (0, 0)),
                pl.BlockSpec((1, Vp), lambda m: (0, 0)),
            ],
            out_specs=pl.BlockSpec((TM, Vp), lambda m: (m, 0)),
        ),
        compiler_params=pltpu.CompilerParams(
            dimension_semantics=("parallel",)),
    )(h2_flat, wo_p, bo_p)

    logits = logits_p[:M, :V]
    h_n = h_n_p[:, :B, :H]
    c_n = c_n_p[:, :B, :H]
    return logits, (h_n, c_n)


def _reference_forward(tokens, params, hidden=None):
    """Pure-JAX reference (mirrors torch.nn.LSTM semantics) for validation."""
    S, B = tokens.shape
    H = params["w1h_t"].shape[0]
    if hidden is None:
        h0 = jnp.zeros((2, B, H), jnp.float32)
        c0 = jnp.zeros((2, B, H), jnp.float32)
    else:
        h0, c0 = hidden
    embeds = jnp.take(params["emb"], tokens, axis=0)

    def cell(x, h, c, wx, wh, b):
        gates = x @ wx + h @ wh + b
        i, f, g, o = jnp.split(gates, 4, axis=-1)
        c_new = jax.nn.sigmoid(f) * c + jax.nn.sigmoid(i) * jnp.tanh(g)
        h_new = jax.nn.sigmoid(o) * jnp.tanh(c_new)
        return h_new, c_new

    def step(carry, x):
        h1, c1, h2, c2 = carry
        h1, c1 = cell(x, h1, c1, params["w1x_t"], params["w1h_t"], params["b1"])
        h2, c2 = cell(h1, h2, c2, params["w2x_t"], params["w2h_t"], params["b2"])
        return (h1, c1, h2, c2), h2

    (h1, c1, h2, c2), outs = jax.lax.scan(step, (h0[0], c0[0], h0[1], c0[1]), embeds)
    logits = outs.reshape(S * B, H) @ params["wo_t"] + params["bo"]
    return logits, (jnp.stack([h1, h2]), jnp.stack([c1, c2]))


def init_params(key, voc_size, emb_dim, hid_dim):
    ks = jax.random.split(key, 12)
    s = 0.1
    return {
        "emb":   jax.random.normal(ks[0], (voc_size, emb_dim), jnp.float32) * s,
        # LSTM layer 1 (input emb_dim): weights stored pre-transposed.
        "w1x_t": jax.random.normal(ks[1], (emb_dim, 4 * hid_dim), jnp.float32) * s,
        "w1h_t": jax.random.normal(ks[2], (hid_dim, 4 * hid_dim), jnp.float32) * s,
        "b1":    (jax.random.normal(ks[3], (1, 4 * hid_dim), jnp.float32) * s
                  + jax.random.normal(ks[4], (1, 4 * hid_dim), jnp.float32) * s),
        # LSTM layer 2 (input hid_dim).
        "w2x_t": jax.random.normal(ks[5], (hid_dim, 4 * hid_dim), jnp.float32) * s,
        "w2h_t": jax.random.normal(ks[6], (hid_dim, 4 * hid_dim), jnp.float32) * s,
        "b2":    (jax.random.normal(ks[7], (1, 4 * hid_dim), jnp.float32) * s
                  + jax.random.normal(ks[8], (1, 4 * hid_dim), jnp.float32) * s),
        # Output linear layer.
        "wo_t":  jax.random.normal(ks[9], (hid_dim, voc_size), jnp.float32) * s,
        "bo":    jax.random.normal(ks[10], (1, voc_size), jnp.float32) * s,
    }


if __name__ == "__main__":
    VOC, EMB, HID = 32, 16, 32
    SEQ, BATCH = 8, 2

    key = jax.random.PRNGKey(0)
    k_param, k_tok, k_h, k_c = jax.random.split(key, 4)
    params = init_params(k_param, VOC, EMB, HID)
    tokens = jax.random.randint(k_tok, (SEQ, BATCH), 0, VOC, dtype=jnp.int32)

    # Case 1: default zero hidden state, seq divisible by the time chunk.
    logits, (h_n, c_n) = poetry_forward(tokens, params)
    jax.block_until_ready((logits, h_n, c_n))
    ref_logits, (ref_h, ref_c) = _reference_forward(tokens, params)
    assert logits.shape == (SEQ * BATCH, VOC)
    assert h_n.shape == (2, BATCH, HID) and c_n.shape == (2, BATCH, HID)
    assert jnp.allclose(logits, ref_logits, atol=1e-4, rtol=1e-4)
    assert jnp.allclose(h_n, ref_h, atol=1e-4, rtol=1e-4)
    assert jnp.allclose(c_n, ref_c, atol=1e-4, rtol=1e-4)

    # Case 2: provided hidden state + ragged seq length (masked tail chunk).
    S2 = 7
    tokens2 = tokens[:S2]
    h0 = jax.random.normal(k_h, (2, BATCH, HID), jnp.float32) * 0.1
    c0 = jax.random.normal(k_c, (2, BATCH, HID), jnp.float32) * 0.1
    logits2, (h_n2, c_n2) = poetry_forward(tokens2, params, hidden=(h0, c0))
    jax.block_until_ready((logits2, h_n2, c_n2))
    ref_logits2, (ref_h2, ref_c2) = _reference_forward(tokens2, params,
                                                       hidden=(h0, c0))
    assert logits2.shape == (S2 * BATCH, VOC)
    assert jnp.allclose(logits2, ref_logits2, atol=1e-4, rtol=1e-4)
    assert jnp.allclose(h_n2, ref_h2, atol=1e-4, rtol=1e-4)
    assert jnp.allclose(c_n2, ref_c2, atol=1e-4, rtol=1e-4)

    print("KERNEL_OK")
</pallas_src>

<mosaic_0001>
module attributes {stable_mosaic.version = 11 : i64} {
  func.func @_lstm_recurrent_kernel(%arg0: i32, %arg1: memref<4x8x512xf32, #tpu.memory_space<vmem>>, %arg2: memref<128x512xf32, #tpu.memory_space<vmem>>, %arg3: memref<256x512xf32, #tpu.memory_space<vmem>>, %arg4: memref<8x512xf32, #tpu.memory_space<vmem>>, %arg5: memref<2x8x128xf32, #tpu.memory_space<vmem>>, %arg6: memref<2x8x128xf32, #tpu.memory_space<vmem>>, %arg7: memref<4x8x128xf32, #tpu.memory_space<vmem>>, %arg8: memref<2x8x128xf32, #tpu.memory_space<vmem>>, %arg9: memref<2x8x128xf32, #tpu.memory_space<vmem>>, %arg10: memref<8x128xf32, #tpu.memory_space<vmem>>, %arg11: memref<8x128xf32, #tpu.memory_space<vmem>>, %arg12: memref<8x128xf32, #tpu.memory_space<vmem>>, %arg13: memref<8x128xf32, #tpu.memory_space<vmem>>) attributes {dimension_semantics = [#tpu.dimension_semantics<arbitrary>], iteration_bounds = array<i64: 2>, scalar_prefetch = 0 : i64, scratch_operands = 4 : i64, tpu.core_type = #tpu.core_type<tc>, window_params = [{transform_indices = @transform_0, window_bounds = array<i64: 4, 8, 512>}, {pipeline_mode = #tpu.pipeline_mode<synchronous>, transform_indices = @transform_1, window_bounds = array<i64: 128, 512>}, {pipeline_mode = #tpu.pipeline_mode<synchronous>, transform_indices = @transform_2, window_bounds = array<i64: 256, 512>}, {pipeline_mode = #tpu.pipeline_mode<synchronous>, transform_indices = @transform_3, window_bounds = array<i64: 8, 512>}, {pipeline_mode = #tpu.pipeline_mode<synchronous>, transform_indices = @transform_4, window_bounds = array<i64: 2, 8, 128>}, {pipeline_mode = #tpu.pipeline_mode<synchronous>, transform_indices = @transform_5, window_bounds = array<i64: 2, 8, 128>}, {transform_indices = @transform_6, window_bounds = array<i64: 4, 8, 128>}, {pipeline_mode = #tpu.pipeline_mode<synchronous>, transform_indices = @transform_7, window_bounds = array<i64: 2, 8, 128>}, {pipeline_mode = #tpu.pipeline_mode<synchronous>, transform_indices = @transform_8, window_bounds = array<i64: 2, 8, 128>}]} {
    %c0_i32 = arith.constant 0 : i32
    %0 = arith.cmpi eq, %arg0, %c0_i32 : i32
    %1 = arith.extui %0 : i1 to i32
    %c0_i32_0 = arith.constant 0 : i32
    %2 = arith.cmpi ne, %1, %c0_i32_0 : i32
    scf.if %2 {
      %c0_75 = arith.constant 0 : index
      %c0_76 = arith.constant 0 : index
      %c0_77 = arith.constant 0 : index
      %257 = vector.load %arg5[%c0_75, %c0_76, %c0_77] : memref<2x8x128xf32, #tpu.memory_space<vmem>>, vector<1x8x128xf32>
      %258 = vector.shape_cast %257 : vector<1x8x128xf32> to vector<8x128xf32>
      %c0_78 = arith.constant 0 : index
      %c0_79 = arith.constant 0 : index
      %259 = vector.load %arg10[%c0_78, %c0_79] : memref<8x128xf32, #tpu.memory_space<vmem>>, vector<8x128xf32>
      tpu.vector_store %arg10[%c0_78, %c0_79], %258 {strides = array<i32>} : memref<8x128xf32, #tpu.memory_space<vmem>>, vector<8x128xf32>,
      %c0_80 = arith.constant 0 : index
      %c0_81 = arith.constant 0 : index
      %c0_82 = arith.constant 0 : index
      %260 = vector.load %arg6[%c0_80, %c0_81, %c0_82] : memref<2x8x128xf32, #tpu.memory_space<vmem>>, vector<1x8x128xf32>
      %261 = vector.shape_cast %260 : vector<1x8x128xf32> to vector<8x128xf32>
      %c0_83 = arith.constant 0 : index
      %c0_84 = arith.constant 0 : index
      %262 = vector.load %arg11[%c0_83, %c0_84] : memref<8x128xf32, #tpu.memory_space<vmem>>, vector<8x128xf32>
      tpu.vector_store %arg11[%c0_83, %c0_84], %261 {strides = array<i32>} : memref<8x128xf32, #tpu.memory_space<vmem>>, vector<8x128xf32>,
      %c1_85 = arith.constant 1 : index
      %c0_86 = arith.constant 0 : index
      %c0_87 = arith.constant 0 : index
      %263 = vector.load %arg5[%c1_85, %c0_86, %c0_87] : memref<2x8x128xf32, #tpu.memory_space<vmem>>, vector<1x8x128xf32>
      %264 = vector.shape_cast %263 : vector<1x8x128xf32> to vector<8x128xf32>
      %c0_88 = arith.constant 0 : index
      %c0_89 = arith.constant 0 : index
      %265 = vector.load %arg12[%c0_88, %c0_89] : memref<8x128xf32, #tpu.memory_space<vmem>>, vector<8x128xf32>
      tpu.vector_store %arg12[%c0_88, %c0_89], %264 {strides = array<i32>} : memref<8x128xf32, #tpu.memory_space<vmem>>, vector<8x128xf32>,
      %c1_90 = arith.constant 1 : index
      %c0_91 = arith.constant 0 : index
      %c0_92 = arith.constant 0 : index
      %266 = vector.load %arg6[%c1_90, %c0_91, %c0_92] : memref<2x8x128xf32, #tpu.memory_space<vmem>>, vector<1x8x128xf32>
      %267 = vector.shape_cast %266 : vector<1x8x128xf32> to vector<8x128xf32>
      %c0_93 = arith.constant 0 : index
      %c0_94 = arith.constant 0 : index
      %268 = vector.load %arg13[%c0_93, %c0_94] : memref<8x128xf32, #tpu.memory_space<vmem>>, vector<8x128xf32>
      tpu.vector_store %arg13[%c0_93, %c0_94], %267 {strides = array<i32>} : memref<8x128xf32, #tpu.memory_space<vmem>>, vector<8x128xf32>,
    } else {
    }
    %c0 = arith.constant 0 : index
    %c0_1 = arith.constant 0 : index
    %3 = vector.load %arg10[%c0, %c0_1] : memref<8x128xf32, #tpu.memory_space<vmem>>, vector<8x128xf32>
    %c0_2 = arith.constant 0 : index
    %c0_3 = arith.constant 0 : index
    %4 = vector.load %arg11[%c0_2, %c0_3] : memref<8x128xf32, #tpu.memory_space<vmem>>, vector<8x128xf32>
    %c0_4 = arith.constant 0 : index
    %c0_5 = arith.constant 0 : index
    %5 = vector.load %arg12[%c0_4, %c0_5] : memref<8x128xf32, #tpu.memory_space<vmem>>, vector<8x128xf32>
    %c0_6 = arith.constant 0 : index
    %c0_7 = arith.constant 0 : index
    %6 = vector.load %arg13[%c0_6, %c0_7] : memref<8x128xf32, #tpu.memory_space<vmem>>, vector<8x128xf32>
    %c0_8 = arith.constant 0 : index
    %c0_9 = arith.constant 0 : index
    %7 = vector.load %arg2[%c0_8, %c0_9] : memref<128x512xf32, #tpu.memory_space<vmem>>, vector<128x512xf32>
    %c0_10 = arith.constant 0 : index
    %c0_11 = arith.constant 0 : index
    %8 = vector.load %arg3[%c0_10, %c0_11] : memref<256x512xf32, #tpu.memory_space<vmem>>, vector<256x512xf32>
    %c0_12 = arith.constant 0 : index
    %c0_13 = arith.constant 0 : index
    %9 = vector.load %arg4[%c0_12, %c0_13] : memref<8x512xf32, #tpu.memory_space<vmem>>, vector<8x512xf32>
    %c0_14 = arith.constant 0 : index
    %c0_15 = arith.constant 0 : index
    %c0_16 = arith.constant 0 : index
    %10 = vector.load %arg1[%c0_14, %c0_15, %c0_16] : memref<4x8x512xf32, #tpu.memory_space<vmem>>, vector<1x8x512xf32>
    %11 = vector.shape_cast %10 : vector<1x8x512xf32> to vector<8x512xf32>
    %cst = arith.constant dense<0.000000e+00> : vector<8x512xf32>
    %12 = tpu.matmul %3, %7, %cst {dimension_numbers = #tpu.dot_dimension_numbers<[1], [0], [0], [1], [0, 0, 1, 1], [], []>} : vector<8x128xf32>, vector<128x512xf32>, vector<8x512xf32> -> vector<8x512xf32>
    %13 = arith.addf %11, %12 : vector<8x512xf32>
    %14 = vector.extract_strided_slice %13 {offsets = [0, 0], sizes = [8, 128], strides = [1, 1]} : vector<8x512xf32> to vector<8x128xf32>
    %15 = arith.negf %14 : vector<8x128xf32>
    %16 = math.exp %15 : vector<8x128xf32>
    %cst_17 = arith.constant 1.000000e+00 : f32
    %17 = vector.broadcast %cst_17 : f32 to vector<8x128xf32>
    %18 = arith.addf %17, %16 : vector<8x128xf32>
    %19 = arith.divf %17, %18 : vector<8x128xf32>
    %20 = vector.extract_strided_slice %13 {offsets = [0, 128], sizes = [8, 128], strides = [1, 1]} : vector<8x512xf32> to vector<8x128xf32>
    %21 = arith.negf %20 : vector<8x128xf32>
    %22 = math.exp %21 : vector<8x128xf32>
    %cst_18 = arith.constant 1.000000e+00 : f32
    %23 = vector.broadcast %cst_18 : f32 to vector<8x128xf32>
    %24 = arith.addf %23, %22 : vector<8x128xf32>
    %25 = arith.divf %23, %24 : vector<8x128xf32>
    %26 = vector.extract_strided_slice %13 {offsets = [0, 256], sizes = [8, 128], strides = [1, 1]} : vector<8x512xf32> to vector<8x128xf32>
    %27 = math.tanh %26 : vector<8x128xf32>
    %28 = vector.extract_strided_slice %13 {offsets = [0, 384], sizes = [8, 128], strides = [1, 1]} : vector<8x512xf32> to vector<8x128xf32>
    %29 = arith.negf %28 : vector<8x128xf32>
    %30 = math.exp %29 : vector<8x128xf32>
    %cst_19 = arith.constant 1.000000e+00 : f32
    %31 = vector.broadcast %cst_19 : f32 to vector<8x128xf32>
    %32 = arith.addf %31, %30 : vector<8x128xf32>
    %33 = arith.divf %31, %32 : vector<8x128xf32>
    %34 = arith.mulf %25, %4 : vector<8x128xf32>
    %35 = arith.mulf %19, %27 : vector<8x128xf32>
    %36 = arith.addf %34, %35 : vector<8x128xf32>
    %37 = math.tanh %36 : vector<8x128xf32>
    %38 = arith.mulf %33, %37 : vector<8x128xf32>
    %39 = tpu.concatenate %38, %5 in 1 : vector<8x128xf32>, vector<8x128xf32> -> vector<8x256xf32>
    %cst_20 = arith.constant dense<0.000000e+00> : vector<8x512xf32>
    %40 = tpu.matmul %39, %8, %cst_20 {dimension_numbers = #tpu.dot_dimension_numbers<[1], [0], [0], [1], [0, 0, 1, 1], [], []>} : vector<8x256xf32>, vector<256x512xf32>, vector<8x512xf32> -> vector<8x512xf32>
    %41 = arith.addf %40, %9 : vector<8x512xf32>
    %42 = vector.extract_strided_slice %41 {offsets = [0, 0], sizes = [8, 128], strides = [1, 1]} : vector<8x512xf32> to vector<8x128xf32>
    %43 = arith.negf %42 : vector<8x128xf32>
    %44 = math.exp %43 : vector<8x128xf32>
    %cst_21 = arith.constant 1.000000e+00 : f32
    %45 = vector.broadcast %cst_21 : f32 to vector<8x128xf32>
    %46 = arith.addf %45, %44 : vector<8x128xf32>
    %47 = arith.divf %45, %46 : vector<8x128xf32>
    %48 = vector.extract_strided_slice %41 {offsets = [0, 128], sizes = [8, 128], strides = [1, 1]} : vector<8x512xf32> to vector<8x128xf32>
    %49 = arith.negf %48 : vector<8x128xf32>
    %50 = math.exp %49 : vector<8x128xf32>
    %cst_22 = arith.constant 1.000000e+00 : f32
    %51 = vector.broadcast %cst_22 : f32 to vector<8x128xf32>
    %52 = arith.addf %51, %50 : vector<8x128xf32>
    %53 = arith.divf %51, %52 : vector<8x128xf32>
    %54 = vector.extract_strided_slice %41 {offsets = [0, 256], sizes = [8, 128], strides = [1, 1]} : vector<8x512xf32> to vector<8x128xf32>
    %55 = math.tanh %54 : vector<8x128xf32>
    %56 = vector.extract_strided_slice %41 {offsets = [0, 384], sizes = [8, 128], strides = [1, 1]} : vector<8x512xf32> to vector<8x128xf32>
    %57 = arith.negf %56 : vector<8x128xf32>
    %58 = math.exp %57 : vector<8x128xf32>
    %cst_23 = arith.constant 1.000000e+00 : f32
    %59 = vector.broadcast %cst_23 : f32 to vector<8x128xf32>
    %60 = arith.addf %59, %58 : vector<8x128xf32>
    %61 = arith.divf %59, %60 : vector<8x128xf32>
    %62 = arith.mulf %53, %6 : vector<8x128xf32>
    %63 = arith.mulf %47, %55 : vector<8x128xf32>
    %64 = arith.addf %62, %63 : vector<8x128xf32>
    %65 = math.tanh %64 : vector<8x128xf32>
    %66 = arith.mulf %61, %65 : vector<8x128xf32>
    %c0_24 = arith.constant 0 : index
    %c0_25 = arith.constant 0 : index
    %c0_26 = arith.constant 0 : index
    %67 = vector.load %arg7[%c0_24, %c0_25, %c0_26] : memref<4x8x128xf32, #tpu.memory_space<vmem>>, vector<1x8x128xf32>
    %68 = vector.shape_cast %67 : vector<1x8x128xf32> to vector<8x128xf32>
    %69 = vector.shape_cast %66 : vector<8x128xf32> to vector<1x8x128xf32>
    tpu.vector_store %arg7[%c0_24, %c0_25, %c0_26], %69 {strides = array<i32>} : memref<4x8x128xf32, #tpu.memory_space<vmem>>, vector<1x8x128xf32>,
    %c1 = arith.constant 1 : index
    %c0_27 = arith.constant 0 : index
    %c0_28 = arith.constant 0 : index
    %70 = vector.load %arg1[%c1, %c0_27, %c0_28] : memref<4x8x512xf32, #tpu.memory_space<vmem>>, vector<1x8x512xf32>
    %71 = vector.shape_cast %70 : vector<1x8x512xf32> to vector<8x512xf32>
    %cst_29 = arith.constant dense<0.000000e+00> : vector<8x512xf32>
    %72 = tpu.matmul %38, %7, %cst_29 {dimension_numbers = #tpu.dot_dimension_numbers<[1], [0], [0], [1], [0, 0, 1, 1], [], []>} : vector<8x128xf32>, vector<128x512xf32>, vector<8x512xf32> -> vector<8x512xf32>
    %73 = arith.addf %71, %72 : vector<8x512xf32>
    %74 = vector.extract_strided_slice %73 {offsets = [0, 0], sizes = [8, 128], strides = [1, 1]} : vector<8x512xf32> to vector<8x128xf32>
    %75 = arith.negf %74 : vector<8x128xf32>
    %76 = math.exp %75 : vector<8x128xf32>
    %cst_30 = arith.constant 1.000000e+00 : f32
    %77 = vector.broadcast %cst_30 : f32 to vector<8x128xf32>
    %78 = arith.addf %77, %76 : vector<8x128xf32>
    %79 = arith.divf %77, %78 : vector<8x128xf32>
    %80 = vector.extract_strided_slice %73 {offsets = [0, 128], sizes = [8, 128], strides = [1, 1]} : vector<8x512xf32> to vector<8x128xf32>
    %81 = arith.negf %80 : vector<8x128xf32>
    %82 = math.exp %81 : vector<8x128xf32>
    %cst_31 = arith.constant 1.000000e+00 : f32
    %83 = vector.broadcast %cst_31 : f32 to vector<8x128xf32>
    %84 = arith.addf %83, %82 : vector<8x128xf32>
    %85 = arith.divf %83, %84 : vector<8x128xf32>
    %86 = vector.extract_strided_slice %73 {offsets = [0, 256], sizes = [8, 128], strides = [1, 1]} : vector<8x512xf32> to vector<8x128xf32>
    %87 = math.tanh %86 : vector<8x128xf32>
    %88 = vector.extract_strided_slice %73 {offsets = [0, 384], sizes = [8, 128], strides = [1, 1]} : vector<8x512xf32> to vector<8x128xf32>
    %89 = arith.negf %88 : vector<8x128xf32>
    %90 = math.exp %89 : vector<8x128xf32>
    %cst_32 = arith.constant 1.000000e+00 : f32
    %91 = vector.broadcast %cst_32 : f32 to vector<8x128xf32>
    %92 = arith.addf %91, %90 : vector<8x128xf32>
    %93 = arith.divf %91, %92 : vector<8x128xf32>
    %94 = arith.mulf %85, %36 : vector<8x128xf32>
    %95 = arith.mulf %79, %87 : vector<8x128xf32>
    %96 = arith.addf %94, %95 : vector<8x128xf32>
    %97 = math.tanh %96 : vector<8x128xf32>
    %98 = arith.mulf %93, %97 : vector<8x128xf32>
    %99 = tpu.concatenate %98, %66 in 1 : vector<8x128xf32>, vector<8x128xf32> -> vector<8x256xf32>
    %cst_33 = arith.constant dense<0.000000e+00> : vector<8x512xf32>
    %100 = tpu.matmul %99, %8, %cst_33 {dimension_numbers = #tpu.dot_dimension_numbers<[1], [0], [0], [1], [0, 0, 1, 1], [], []>} : vector<8x256xf32>, vector<256x512xf32>, vector<8x512xf32> -> vector<8x512xf32>
    %101 = arith.addf %100, %9 : vector<8x512xf32>
    %102 = vector.extract_strided_slice %101 {offsets = [0, 0], sizes = [8, 128], strides = [1, 1]} : vector<8x512xf32> to vector<8x128xf32>
    %103 = arith.negf %102 : vector<8x128xf32>
    %104 = math.exp %103 : vector<8x128xf32>
    %cst_34 = arith.constant 1.000000e+00 : f32
    %105 = vector.broadcast %cst_34 : f32 to vector<8x128xf32>
    %106 = arith.addf %105, %104 : vector<8x128xf32>
    %107 = arith.divf %105, %106 : vector<8x128xf32>
    %108 = vector.extract_strided_slice %101 {offsets = [0, 128], sizes = [8, 128], strides = [1, 1]} : vector<8x512xf32> to vector<8x128xf32>
    %109 = arith.negf %108 : vector<8x128xf32>
    %110 = math.exp %109 : vector<8x128xf32>
    %cst_35 = arith.constant 1.000000e+00 : f32
    %111 = vector.broadcast %cst_35 : f32 to vector<8x128xf32>
    %112 = arith.addf %111, %110 : vector<8x128xf32>
    %113 = arith.divf %111, %112 : vector<8x128xf32>
    %114 = vector.extract_strided_slice %101 {offsets = [0, 256], sizes = [8, 128], strides = [1, 1]} : vector<8x512xf32> to vector<8x128xf32>
    %115 = math.tanh %114 : vector<8x128xf32>
    %116 = vector.extract_strided_slice %101 {offsets = [0, 384], sizes = [8, 128], strides = [1, 1]} : vector<8x512xf32> to vector<8x128xf32>
    %117 = arith.negf %116 : vector<8x128xf32>
    %118 = math.exp %117 : vector<8x128xf32>
    %cst_36 = arith.constant 1.000000e+00 : f32
    %119 = vector.broadcast %cst_36 : f32 to vector<8x128xf32>
    %120 = arith.addf %119, %118 : vector<8x128xf32>
    %121 = arith.divf %119, %120 : vector<8x128xf32>
    %122 = arith.mulf %113, %64 : vector<8x128xf32>
    %123 = arith.mulf %107, %115 : vector<8x128xf32>
    %124 = arith.addf %122, %123 : vector<8x128xf32>
    %125 = math.tanh %124 : vector<8x128xf32>
    %126 = arith.mulf %121, %125 : vector<8x128xf32>
    %c1_37 = arith.constant 1 : index
    %c0_38 = arith.constant 0 : index
    %c0_39 = arith.constant 0 : index
    %127 = vector.load %arg7[%c1_37, %c0_38, %c0_39] : memref<4x8x128xf32, #tpu.memory_space<vmem>>, vector<1x8x128xf32>
    %128 = vector.shape_cast %127 : vector<1x8x128xf32> to vector<8x128xf32>
    %129 = vector.shape_cast %126 : vector<8x128xf32> to vector<1x8x128xf32>
    tpu.vector_store %arg7[%c1_37, %c0_38, %c0_39], %129 {strides = array<i32>} : memref<4x8x128xf32, #tpu.memory_space<vmem>>, vector<1x8x128xf32>,
    %c2 = arith.constant 2 : index
    %c0_40 = arith.constant 0 : index
    %c0_41 = arith.constant 0 : index
    %130 = vector.load %arg1[%c2, %c0_40, %c0_41] : memref<4x8x512xf32, #tpu.memory_space<vmem>>, vector<1x8x512xf32>
    %131 = vector.shape_cast %130 : vector<1x8x512xf32> to vector<8x512xf32>
    %cst_42 = arith.constant dense<0.000000e+00> : vector<8x512xf32>
    %132 = tpu.matmul %98, %7, %cst_42 {dimension_numbers = #tpu.dot_dimension_numbers<[1], [0], [0], [1], [0, 0, 1, 1], [], []>} : vector<8x128xf32>, vector<128x512xf32>, vector<8x512xf32> -> vector<8x512xf32>
    %133 = arith.addf %131, %132 : vector<8x512xf32>
    %134 = vector.extract_strided_slice %133 {offsets = [0, 0], sizes = [8, 128], strides = [1, 1]} : vector<8x512xf32> to vector<8x128xf32>
    %135 = arith.negf %134 : vector<8x128xf32>
    %136 = math.exp %135 : vector<8x128xf32>
    %cst_43 = arith.constant 1.000000e+00 : f32
    %137 = vector.broadcast %cst_43 : f32 to vector<8x128xf32>
    %138 = arith.addf %137, %136 : vector<8x128xf32>
    %139 = arith.divf %137, %138 : vector<8x128xf32>
    %140 = vector.extract_strided_slice %133 {offsets = [0, 128], sizes = [8, 128], strides = [1, 1]} : vector<8x512xf32> to vector<8x128xf32>
    %141 = arith.negf %140 : vector<8x128xf32>
    %142 = math.exp %141 : vector<8x128xf32>
    %cst_44 = arith.constant 1.000000e+00 : f32
    %143 = vector.broadcast %cst_44 : f32 to vector<8x128xf32>
    %144 = arith.addf %143, %142 : vector<8x128xf32>
    %145 = arith.divf %143, %144 : vector<8x128xf32>
    %146 = vector.extract_strided_slice %133 {offsets = [0, 256], sizes = [8, 128], strides = [1, 1]} : vector<8x512xf32> to vector<8x128xf32>
    %147 = math.tanh %146 : vector<8x128xf32>
    %148 = vector.extract_strided_slice %133 {offsets = [0, 384], sizes = [8, 128], strides = [1, 1]} : vector<8x512xf32> to vector<8x128xf32>
    %149 = arith.negf %148 : vector<8x128xf32>
    %150 = math.exp %149 : vector<8x128xf32>
    %cst_45 = arith.constant 1.000000e+00 : f32
    %151 = vector.broadcast %cst_45 : f32 to vector<8x128xf32>
    %152 = arith.addf %151, %150 : vector<8x128xf32>
    %153 = arith.divf %151, %152 : vector<8x128xf32>
    %154 = arith.mulf %145, %96 : vector<8x128xf32>
    %155 = arith.mulf %139, %147 : vector<8x128xf32>
    %156 = arith.addf %154, %155 : vector<8x128xf32>
    %157 = math.tanh %156 : vector<8x128xf32>
    %158 = arith.mulf %153, %157 : vector<8x128xf32>
    %159 = tpu.concatenate %158, %126 in 1 : vector<8x128xf32>, vector<8x128xf32> -> vector<8x256xf32>
    %cst_46 = arith.constant dense<0.000000e+00> : vector<8x512xf32>
    %160 = tpu.matmul %159, %8, %cst_46 {dimension_numbers = #tpu.dot_dimension_numbers<[1], [0], [0], [1], [0, 0, 1, 1], [], []>} : vector<8x256xf32>, vector<256x512xf32>, vector<8x512xf32> -> vector<8x512xf32>
    %161 = arith.addf %160, %9 : vector<8x512xf32>
    %162 = vector.extract_strided_slice %161 {offsets = [0, 0], sizes = [8, 128], strides = [1, 1]} : vector<8x512xf32> to vector<8x128xf32>
    %163 = arith.negf %162 : vector<8x128xf32>
    %164 = math.exp %163 : vector<8x128xf32>
    %cst_47 = arith.constant 1.000000e+00 : f32
    %165 = vector.broadcast %cst_47 : f32 to vector<8x128xf32>
    %166 = arith.addf %165, %164 : vector<8x128xf32>
    %167 = arith.divf %165, %166 : vector<8x128xf32>
    %168 = vector.extract_strided_slice %161 {offsets = [0, 128], sizes = [8, 128], strides = [1, 1]} : vector<8x512xf32> to vector<8x128xf32>
    %169 = arith.negf %168 : vector<8x128xf32>
    %170 = math.exp %169 : vector<8x128xf32>
    %cst_48 = arith.constant 1.000000e+00 : f32
    %171 = vector.broadcast %cst_48 : f32 to vector<8x128xf32>
    %172 = arith.addf %171, %170 : vector<8x128xf32>
    %173 = arith.divf %171, %172 : vector<8x128xf32>
    %174 = vector.extract_strided_slice %161 {offsets = [0, 256], sizes = [8, 128], strides = [1, 1]} : vector<8x512xf32> to vector<8x128xf32>
    %175 = math.tanh %174 : vector<8x128xf32>
    %176 = vector.extract_strided_slice %161 {offsets = [0, 384], sizes = [8, 128], strides = [1, 1]} : vector<8x512xf32> to vector<8x128xf32>
    %177 = arith.negf %176 : vector<8x128xf32>
    %178 = math.exp %177 : vector<8x128xf32>
    %cst_49 = arith.constant 1.000000e+00 : f32
    %179 = vector.broadcast %cst_49 : f32 to vector<8x128xf32>
    %180 = arith.addf %179, %178 : vector<8x128xf32>
    %181 = arith.divf %179, %180 : vector<8x128xf32>
    %182 = arith.mulf %173, %124 : vector<8x128xf32>
    %183 = arith.mulf %167, %175 : vector<8x128xf32>
    %184 = arith.addf %182, %183 : vector<8x128xf32>
    %185 = math.tanh %184 : vector<8x128xf32>
    %186 = arith.mulf %181, %185 : vector<8x128xf32>
    %c2_50 = arith.constant 2 : index
    %c0_51 = arith.constant 0 : index
    %c0_52 = arith.constant 0 : index
    %187 = vector.load %arg7[%c2_50, %c0_51, %c0_52] : memref<4x8x128xf32, #tpu.memory_space<vmem>>, vector<1x8x128xf32>
    %188 = vector.shape_cast %187 : vector<1x8x128xf32> to vector<8x128xf32>
    %189 = vector.shape_cast %186 : vector<8x128xf32> to vector<1x8x128xf32>
    tpu.vector_store %arg7[%c2_50, %c0_51, %c0_52], %189 {strides = array<i32>} : memref<4x8x128xf32, #tpu.memory_space<vmem>>, vector<1x8x128xf32>,
    %c3 = arith.constant 3 : index
    %c0_53 = arith.constant 0 : index
    %c0_54 = arith.constant 0 : index
    %190 = vector.load %arg1[%c3, %c0_53, %c0_54] : memref<4x8x512xf32, #tpu.memory_space<vmem>>, vector<1x8x512xf32>
    %191 = vector.shape_cast %190 : vector<1x8x512xf32> to vector<8x512xf32>
    %cst_55 = arith.constant dense<0.000000e+00> : vector<8x512xf32>
    %192 = tpu.matmul %158, %7, %cst_55 {dimension_numbers = #tpu.dot_dimension_numbers<[1], [0], [0], [1], [0, 0, 1, 1], [], []>} : vector<8x128xf32>, vector<128x512xf32>, vector<8x512xf32> -> vector<8x512xf32>
    %193 = arith.addf %191, %192 : vector<8x512xf32>
    %194 = vector.extract_strided_slice %193 {offsets = [0, 0], sizes = [8, 128], strides = [1, 1]} : vector<8x512xf32> to vector<8x128xf32>
    %195 = arith.negf %194 : vector<8x128xf32>
    %196 = math.exp %195 : vector<8x128xf32>
    %cst_56 = arith.constant 1.000000e+00 : f32
    %197 = vector.broadcast %cst_56 : f32 to vector<8x128xf32>
    %198 = arith.addf %197, %196 : vector<8x128xf32>
    %199 = arith.divf %197, %198 : vector<8x128xf32>
    %200 = vector.extract_strided_slice %193 {offsets = [0, 128], sizes = [8, 128], strides = [1, 1]} : vector<8x512xf32> to vector<8x128xf32>
    %201 = arith.negf %200 : vector<8x128xf32>
    %202 = math.exp %201 : vector<8x128xf32>
    %cst_57 = arith.constant 1.000000e+00 : f32
    %203 = vector.broadcast %cst_57 : f32 to vector<8x128xf32>
    %204 = arith.addf %203, %202 : vector<8x128xf32>
    %205 = arith.divf %203, %204 : vector<8x128xf32>
    %206 = vector.extract_strided_slice %193 {offsets = [0, 256], sizes = [8, 128], strides = [1, 1]} : vector<8x512xf32> to vector<8x128xf32>
    %207 = math.tanh %206 : vector<8x128xf32>
    %208 = vector.extract_strided_slice %193 {offsets = [0, 384], sizes = [8, 128], strides = [1, 1]} : vector<8x512xf32> to vector<8x128xf32>
    %209 = arith.negf %208 : vector<8x128xf32>
    %210 = math.exp %209 : vector<8x128xf32>
    %cst_58 = arith.constant 1.000000e+00 : f32
    %211 = vector.broadcast %cst_58 : f32 to vector<8x128xf32>
    %212 = arith.addf %211, %210 : vector<8x128xf32>
    %213 = arith.divf %211, %212 : vector<8x128xf32>
    %214 = arith.mulf %205, %156 : vector<8x128xf32>
    %215 = arith.mulf %199, %207 : vector<8x128xf32>
    %216 = arith.addf %214, %215 : vector<8x128xf32>
    %217 = math.tanh %216 : vector<8x128xf32>
    %218 = arith.mulf %213, %217 : vector<8x128xf32>
    %219 = tpu.concatenate %218, %186 in 1 : vector<8x128xf32>, vector<8x128xf32> -> vector<8x256xf32>
    %cst_59 = arith.constant dense<0.000000e+00> : vector<8x512xf32>
    %220 = tpu.matmul %219, %8, %cst_59 {dimension_numbers = #tpu.dot_dimension_numbers<[1], [0], [0], [1], [0, 0, 1, 1], [], []>} : vector<8x256xf32>, vector<256x512xf32>, vector<8x512xf32> -> vector<8x512xf32>
    %221 = arith.addf %220, %9 : vector<8x512xf32>
    %222 = vector.extract_strided_slice %221 {offsets = [0, 0], sizes = [8, 128], strides = [1, 1]} : vector<8x512xf32> to vector<8x128xf32>
    %223 = arith.negf %222 : vector<8x128xf32>
    %224 = math.exp %223 : vector<8x128xf32>
    %cst_60 = arith.constant 1.000000e+00 : f32
    %225 = vector.broadcast %cst_60 : f32 to vector<8x128xf32>
    %226 = arith.addf %225, %224 : vector<8x128xf32>
    %227 = arith.divf %225, %226 : vector<8x128xf32>
    %228 = vector.extract_strided_slice %221 {offsets = [0, 128], sizes = [8, 128], strides = [1, 1]} : vector<8x512xf32> to vector<8x128xf32>
    %229 = arith.negf %228 : vector<8x128xf32>
    %230 = math.exp %229 : vector<8x128xf32>
    %cst_61 = arith.constant 1.000000e+00 : f32
    %231 = vector.broadcast %cst_61 : f32 to vector<8x128xf32>
    %232 = arith.addf %231, %230 : vector<8x128xf32>
    %233 = arith.divf %231, %232 : vector<8x128xf32>
    %234 = vector.extract_strided_slice %221 {offsets = [0, 256], sizes = [8, 128], strides = [1, 1]} : vector<8x512xf32> to vector<8x128xf32>
    %235 = math.tanh %234 : vector<8x128xf32>
    %236 = vector.extract_strided_slice %221 {offsets = [0, 384], sizes = [8, 128], strides = [1, 1]} : vector<8x512xf32> to vector<8x128xf32>
    %237 = arith.negf %236 : vector<8x128xf32>
    %238 = math.exp %237 : vector<8x128xf32>
    %cst_62 = arith.constant 1.000000e+00 : f32
    %239 = vector.broadcast %cst_62 : f32 to vector<8x128xf32>
    %240 = arith.addf %239, %238 : vector<8x128xf32>
    %241 = arith.divf %239, %240 : vector<8x128xf32>
    %242 = arith.mulf %233, %184 : vector<8x128xf32>
    %243 = arith.mulf %227, %235 : vector<8x128xf32>
    %244 = arith.addf %242, %243 : vector<8x128xf32>
    %245 = math.tanh %244 : vector<8x128xf32>
    %246 = arith.mulf %241, %245 : vector<8x128xf32>
    %c3_63 = arith.constant 3 : index
    %c0_64 = arith.constant 0 : index
    %c0_65 = arith.constant 0 : index
    %247 = vector.load %arg7[%c3_63, %c0_64, %c0_65] : memref<4x8x128xf32, #tpu.memory_space<vmem>>, vector<1x8x128xf32>
    %248 = vector.shape_cast %247 : vector<1x8x128xf32> to vector<8x128xf32>
    %249 = vector.shape_cast %246 : vector<8x128xf32> to vector<1x8x128xf32>
    tpu.vector_store %arg7[%c3_63, %c0_64, %c0_65], %249 {strides = array<i32>} : memref<4x8x128xf32, #tpu.memory_space<vmem>>, vector<1x8x128xf32>,
    %c0_66 = arith.constant 0 : index
    %c0_67 = arith.constant 0 : index
    %250 = vector.load %arg10[%c0_66, %c0_67] : memref<8x128xf32, #tpu.memory_space<vmem>>, vector<8x128xf32>
    tpu.vector_store %arg10[%c0_66, %c0_67], %218 {strides = array<i32>} : memref<8x128xf32, #tpu.memory_space<vmem>>, vector<8x128xf32>,
    %c0_68 = arith.constant 0 : index
    %c0_69 = arith.constant 0 : index
    %251 = vector.load %arg11[%c0_68, %c0_69] : memref<8x128xf32, #tpu.memory_space<vmem>>, vector<8x128xf32>
    tpu.vector_store %arg11[%c0_68, %c0_69], %216 {strides = array<i32>} : memref<8x128xf32, #tpu.memory_space<vmem>>, vector<8x128xf32>,
    %c0_70 = arith.constant 0 : index
    %c0_71 = arith.constant 0 : index
    %252 = vector.load %arg12[%c0_70, %c0_71] : memref<8x128xf32, #tpu.memory_space<vmem>>, vector<8x128xf32>
    tpu.vector_store %arg12[%c0_70, %c0_71], %246 {strides = array<i32>} : memref<8x128xf32, #tpu.memory_space<vmem>>, vector<8x128xf32>,
    %c0_72 = arith.constant 0 : index
    %c0_73 = arith.constant 0 : index
    %253 = vector.load %arg13[%c0_72, %c0_73] : memref<8x128xf32, #tpu.memory_space<vmem>>, vector<8x128xf32>
    tpu.vector_store %arg13[%c0_72, %c0_73], %244 {strides = array<i32>} : memref<8x128xf32, #tpu.memory_space<vmem>>, vector<8x128xf32>,
    %c1_i32 = arith.constant 1 : i32
    %254 = arith.cmpi eq, %arg0, %c1_i32 : i32
    %255 = arith.extui %254 : i1 to i32
    %c0_i32_74 = arith.constant 0 : i32
    %256 = arith.cmpi ne, %255, %c0_i32_74 : i32
    scf.if %256 {
      %c0_75 = arith.constant 0 : index
      %c0_76 = arith.constant 0 : index
      %c0_77 = arith.constant 0 : index
      %257 = vector.load %arg8[%c0_75, %c0_76, %c0_77] : memref<2x8x128xf32, #tpu.memory_space<vmem>>, vector<1x8x128xf32>
      %258 = vector.shape_cast %257 : vector<1x8x128xf32> to vector<8x128xf32>
      %259 = vector.shape_cast %218 : vector<8x128xf32> to vector<1x8x128xf32>
      tpu.vector_store %arg8[%c0_75, %c0_76, %c0_77], %259 {strides = array<i32>} : memref<2x8x128xf32, #tpu.memory_space<vmem>>, vector<1x8x128xf32>,
      %c1_78 = arith.constant 1 : index
      %c0_79 = arith.constant 0 : index
      %c0_80 = arith.constant 0 : index
      %260 = vector.load %arg8[%c1_78, %c0_79, %c0_80] : memref<2x8x128xf32, #tpu.memory_space<vmem>>, vector<1x8x128xf32>
      %261 = vector.shape_cast %260 : vector<1x8x128xf32> to vector<8x128xf32>
      %262 = vector.shape_cast %246 : vector<8x128xf32> to vector<1x8x128xf32>
      tpu.vector_store %arg8[%c1_78, %c0_79, %c0_80], %262 {strides = array<i32>} : memref<2x8x128xf32, #tpu.memory_space<vmem>>, vector<1x8x128xf32>,
      %c0_81 = arith.constant 0 : index
      %c0_82 = arith.constant 0 : index
      %c0_83 = arith.constant 0 : index
      %263 = vector.load %arg9[%c0_81, %c0_82, %c0_83] : memref<2x8x128xf32, #tpu.memory_space<vmem>>, vector<1x8x128xf32>
      %264 = vector.shape_cast %263 : vector<1x8x128xf32> to vector<8x128xf32>
      %265 = vector.shape_cast %216 : vector<8x128xf32> to vector<1x8x128xf32>
      tpu.vector_store %arg9[%c0_81, %c0_82, %c0_83], %265 {strides = array<i32>} : memref<2x8x128xf32, #tpu.memory_space<vmem>>, vector<1x8x128xf32>,
      %c1_84 = arith.constant 1 : index
      %c0_85 = arith.constant 0 : index
      %c0_86 = arith.constant 0 : index
      %266 = vector.load %arg9[%c1_84, %c0_85, %c0_86] : memref<2x8x128xf32, #tpu.memory_space<vmem>>, vector<1x8x128xf32>
      %267 = vector.shape_cast %266 : vector<1x8x128xf32> to vector<8x128xf32>
      %268 = vector.shape_cast %244 : vector<8x128xf32> to vector<1x8x128xf32>
      tpu.vector_store %arg9[%c1_84, %c0_85, %c0_86], %268 {strides = array<i32>} : memref<2x8x128xf32, #tpu.memory_space<vmem>>, vector<1x8x128xf32>,
    } else {
    }
    return
  }
  func.func @transform_0(%arg0: i32) -> (i32, i32, i32) {
    %c0_i32 = arith.constant 0 : i32
    %c0_i32_0 = arith.constant 0 : i32
    %c0_i32_1 = arith.constant 0 : i32
    return %arg0, %c0_i32, %c0_i32_0 : i32, i32, i32
  }
  func.func @transform_1(%arg0: i32) -> (i32, i32) {
    %c0_i32 = arith.constant 0 : i32
    %c0_i32_0 = arith.constant 0 : i32
    %c0_i32_1 = arith.constant 0 : i32
    return %c0_i32, %c0_i32_0 : i32, i32
  }
  func.func @transform_2(%arg0: i32) -> (i32, i32) {
    %c0_i32 = arith.constant 0 : i32
    %c0_i32_0 = arith.constant 0 : i32
    %c0_i32_1 = arith.constant 0 : i32
    return %c0_i32, %c0_i32_0 : i32, i32
  }
  func.func @transform_3(%arg0: i32) -> (i32, i32) {
    %c0_i32 = arith.constant 0 : i32
    %c0_i32_0 = arith.constant 0 : i32
    %c0_i32_1 = arith.constant 0 : i32
    return %c0_i32, %c0_i32_0 : i32, i32
  }
  func.func @transform_4(%arg0: i32) -> (i32, i32, i32) {
    %c0_i32 = arith.constant 0 : i32
    %c0_i32_0 = arith.constant 0 : i32
    %c0_i32_1 = arith.constant 0 : i32
    %c0_i32_2 = arith.constant 0 : i32
    return %c0_i32, %c0_i32_0, %c0_i32_1 : i32, i32, i32
  }
  func.func @transform_5(%arg0: i32) -> (i32, i32, i32) {
    %c0_i32 = arith.constant 0 : i32
    %c0_i32_0 = arith.constant 0 : i32
    %c0_i32_1 = arith.constant 0 : i32
    %c0_i32_2 = arith.constant 0 : i32
    return %c0_i32, %c0_i32_0, %c0_i32_1 : i32, i32, i32
  }
  func.func @transform_6(%arg0: i32) -> (i32, i32, i32) {
    %c0_i32 = arith.constant 0 : i32
    %c0_i32_0 = arith.constant 0 : i32
    %c0_i32_1 = arith.constant 0 : i32
    return %arg0, %c0_i32, %c0_i32_0 : i32, i32, i32
  }
  func.func @transform_7(%arg0: i32) -> (i32, i32, i32) {
    %c0_i32 = arith.constant 0 : i32
    %c0_i32_0 = arith.constant 0 : i32
    %c0_i32_1 = arith.constant 0 : i32
    %c0_i32_2 = arith.constant 0 : i32
    return %c0_i32, %c0_i32_0, %c0_i32_1 : i32, i32, i32
  }
  func.func @transform_8(%arg0: i32) -> (i32, i32, i32) {
    %c0_i32 = arith.constant 0 : i32
    %c0_i32_0 = arith.constant 0 : i32
    %c0_i32_1 = arith.constant 0 : i32
    %c0_i32_2 = arith.constant 0 : i32
    return %c0_i32, %c0_i32_0, %c0_i32_1 : i32, i32, i32
  }
}

</mosaic_0001>

<bundles_post_ra>
// kernel: tpu_custom_call.1
= control target key start
LH: loop header
LB: loop body
LE: loop exit
PB: predicated region body
PF: predicated region fallthrough
CT: control target
= control target key end

     0   :  { %14 = vsyncpa [#allocation7], 0  ;;  %s4565_s0 = inlined_call_operand.hbm [shape: f32[8,8,512], index: 0, kind: input, shape index: {}]   ;;  %s4566_s1 = inlined_call_operand.hbm [shape: f32[128,512], index: 1, kind: input, shape index: {}]   ;;  %s4567_s2 = inlined_call_operand.hbm [shape: f32[256,512], index: 2, kind: input, shape index: {}]   ;;  %s4568_s3 = inlined_call_operand.hbm [shape: f32[8,512], index: 3, kind: input, shape index: {}]   ;;  %s4569_s4 = inlined_call_operand.hbm [shape: f32[2,8,128], index: 4, kind: input, shape index: {}]   ;;  %s4570_s5 = inlined_call_operand.vmem [shape: f32[2,8,128], index: 5, kind: input, shape index: {}]   ;;  %s4571_s6 = inlined_call_operand.hbm [shape: f32[8,8,128], index: 6, kind: output, shape index: {0}]   ;;  %s4572_s7 = inlined_call_operand.hbm [shape: f32[2,8,128], index: 7, kind: output, shape index: {1}]   ;;  %s4573_s8 = inlined_call_operand.hbm [shape: f32[2,8,128], index: 8, kind: output, shape index: {2}]  }
   0x1   :  { %16 = vsyncpa [#allocation7 + $0x1], 0 }
   0x2   :  { %17 = vsyncpa [#allocation10], 0 }
   0x3   :  { %18 = vsyncpa [#allocation13], 0 }
   0x4   :  { %19 = vsyncpa [#allocation8], 0 }
   0x5   :  { %21 = vsyncpa [#allocation8 + $0x1], 0 }
   0x6   :  { %22 = vsyncpa [#allocation17], 0  ;;  %s3559_s27 = smov 0   ;;  %s3561_s28 = smov 0  }
   0x7   :  { %s3563_s29 = smov 0   ;;  %s3565_s30 = smov 0  }
   0x8 LB: > { %4697 = sst [smem:[#allocation24_spill]] %s3485_s27  ;;  %s3580_s9 = sadd.s32 4294967295, %s3497_s30   ;;  %s3497_s30 = sphi %s3565_s30, %s4952_s30   ;;  %s3493_s29 = sphi %s3563_s29, %s4951_s29   ;;  %s3489_s28 = sphi %s3561_s28, %s4950_s28   ;;  %s3485_s27 = sphi %s3559_s27, %s4949_s27  }
   0x9   : > { %s2149_s10 = sadd.s32 4294967294, %s3497_s30   ;;  %p48_p0 = scmp.ne.s32.totalorder %s3489_s28, %s3485_s27 }
   0xa   : > { %p4574_p1 = scmp.eq.s32.totalorder %s3580_s9, 0  ;;  %p183_p3 = scmp.eq.s32.totalorder %s2149_s10, 1 }
   0xb   : > { %p2150_p5 = scmp.ge.s32.totalorder %s3497_s30, 1  ;;  %p232_p7 = scmp.lt.s32.totalorder %s3497_s30, 3 }
   0xc   : > { %p3589_p4 = por %p4574_p1, %p48_p0  ;;  %p3594_p6 = por %p183_p3, %p48_p0 }
   0xd   : > { %p3600_p9 = pnand %p2150_p5, %p232_p7  ;;  %s3499_s14 = smov [#allocation9]  }
   0xe   : > { %s4698_s11 = scalar_select %p3589_p4, 1, 0 }
   0xf   : > { %s4699_s12 = scalar_select %p3594_p6, 1, 0 }
  0x10   : > { %s4701_s13 = scalar_select %p3600_p9, 1, 0 }
  0x11   : > { %4700 = sst [smem:[#allocation25_spill]] %s4699_s12  ;;  %s244_s15 = sshll.u32 %s3499_s14, 4  ;;  %s3604_s15 = int_to_ptr.vmem [resolvable:$true] %s244_s15 }
  0x12   : > { %p3017_p10 = pneg %p3600_p9  ;;  %s3500_s17 = smov [#allocation12]  }
  0x13   : > { %s271_s18 = sshll.u32 %s3500_s17, 4  ;;  %s3501_s19 = smov [#allocation11]   ;;  %s3615_s18 = int_to_ptr.vmem [resolvable:$true] %s271_s18 }
  0x14   : > { %p3611_p12 = pnand %p3017_p10, %p4574_p1  ;;  %s3617_s20 = sshll.u32 %s3501_s19, 4  ;;  %s258_s20 = int_to_ptr.vmem [resolvable:$true] %s3617_s20 }
  0x15   : > { %s3225_s23 = scalar_lea.hbm %s4566_s1, 8192 }
  0x16   : > { %p3226_p13 = scmp.ne.s32.totalorder %s4566_s1, %s3225_s23  ;;  %p3627_p0 = pneg %p3611_p12 }
  0x17   : > { %p3232_p7 = scmp.lt.u32.totalorder %s3225_s23, %s4566_s1 }
  0x18   : > { %p3228_p3 = pnand %p3627_p0, %p3226_p13 }
  0x1a   : > { %p3229_p5 = pneg %p3228_p3 }
  0x1c   : > { %p3234_p10 = pnand %p3232_p7, %p3229_p5 }
  0x1e   : > { %3237 = shalt.err (!%p3234_p10)
}
  0x1f   : > { %s3238_s17 = scalar_lea.vmem %s3604_s15, 8192  ;;  %p3246_p2 = scmp.lt.s32.totalorder %s3604_s15, %s3604_s15 }
  0x20   : > { %p3239_p11 = scmp.ne.s32.totalorder %s3604_s15, %s3238_s17  ;;  %p3247_p6 = scmp.lt.s32.totalorder %s3238_s17, %s3238_s17 }
  0x22   : > { %p3241_p8 = pnand %p3239_p11, %p3627_p0  ;;  %p3248_p13 = por %p3247_p6, %p3246_p2 }
  0x24   : > { %p3242_p1 = pneg %p3241_p8 }
  0x26   : > { %p3249_p3 = pnand %p3248_p13, %p3242_p1 }
  0x28   : > { %3252 = shalt.err (!%p3249_p3)
}
  0x29   : > { %s3502_s19 = smov 512   ;;  %s3503_s21 = smov 32  }
  0x2a   : > { %3020 = dma.hbm_to_vmem [thread:$0]  (!%p3611_p12), %s4566_s1, 8192, %s3604_s15, [#allocation10], %s3502_s19, %s3502_s19, %s3503_s21  }
  0x2b   : > { %s3253_s10 = scalar_lea.hbm %s4568_s3, 512 }
  0x2c   : > { %p3254_p1 = scmp.ne.s32.totalorder %s4568_s3, %s3253_s10  ;;  %p3260_p8 = scmp.lt.u32.totalorder %s3253_s10, %s4568_s3 }
  0x2e   : > { %p3256_p2 = pnand %p3254_p1, %p3627_p0 }
  0x30   : > { %p3257_p6 = pneg %p3256_p2 }
  0x32   : > { %p3262_p11 = pnand %p3260_p8, %p3257_p6 }
  0x34   : > { %3265 = shalt.err (!%p3262_p11)
}
  0x35   : > { %s3266_s15 = scalar_lea.vmem %s3615_s18, 512  ;;  %p3274_p13 = scmp.lt.s32.totalorder %s3615_s18, %s3615_s18 }
  0x36   : > { %p3267_p5 = scmp.ne.s32.totalorder %s3615_s18, %s3266_s15  ;;  %p3275_p3 = scmp.lt.s32.totalorder %s3266_s15, %s3266_s15 }
  0x38   : > { %p3269_p7 = pnand %p3267_p5, %p3627_p0  ;;  %p3276_p1 = por %p3275_p3, %p3274_p13 }
  0x3a   : > { %p3270_p10 = pneg %p3269_p7 }
  0x3c   : > { %p3277_p2 = pnand %p3276_p1, %p3270_p10 }
  0x3e   : > { %3280 = shalt.err (!%p3277_p2)
}
  0x3f   : > { %3026 = dma.hbm_to_vmem [thread:$0]  (!%p3611_p12), %s4568_s3, 512, %s3615_s18, [#allocation13]  }
  0x40   : > { %s3281_s24 = scalar_lea.hbm %s4567_s2, 16384 }
  0x41   : > { %p3282_p6 = scmp.ne.s32.totalorder %s4567_s2, %s3281_s24  ;;  %p3288_p5 = scmp.lt.u32.totalorder %s3281_s24, %s4567_s2 }
  0x43   : > { %p3284_p8 = pnand %p3282_p6, %p3627_p0 }
  0x45   : > { %p3285_p11 = pneg %p3284_p8 }
  0x47   : > { %p3290_p7 = pnand %p3288_p5, %p3285_p11 }
  0x49   : > { %3293 = shalt.err (!%p3290_p7)
}
  0x4a   : > { %s3294_s15 = scalar_lea.vmem %s258_s20, 16384  ;;  %p3302_p1 = scmp.lt.s32.totalorder %s258_s20, %s258_s20 }
  0x4b   : > { %p3295_p10 = scmp.ne.s32.totalorder %s258_s20, %s3294_s15  ;;  %p3303_p2 = scmp.lt.s32.totalorder %s3294_s15, %s3294_s15 }
  0x4d   : > { %p3297_p13 = pnand %p3295_p10, %p3627_p0  ;;  %p3304_p4 = por %p3303_p2, %p3302_p1 }
  0x4f   : > { %p3298_p3 = pneg %p3297_p13 }
  0x51   : > { %p3305_p9 = pnand %p3304_p4, %p3298_p3 }
  0x53   : > { %3308 = shalt.err (!%p3305_p9)
}
  0x54   : > { %3023 = dma.hbm_to_vmem [thread:$0]  (!%p3611_p12), %s4567_s2, 16384, %s258_s20, [#allocation10], %s3502_s19, %s3502_s19, %s3503_s21  }
  0x55   : > { %s3504_s12 = smov [#allocation14]   ;;  %s3309_s25 = scalar_lea.hbm %s4569_s4, 256 }
  0x56   : > { %s281_s22 = sshll.u32 %s3504_s12, 4  ;;  %p3310_p4 = scmp.ne.s32.totalorder %s4569_s4, %s3309_s25  ;;  %s282_s22 = int_to_ptr.vmem [resolvable:$true] %s281_s22 }
  0x57   : > { %p3316_p8 = scmp.lt.u32.totalorder %s3309_s25, %s4569_s4 }
  0x58   : > { %p3312_p9 = pnand %p3310_p4, %p3627_p0 }
  0x5a   : > { %p3313_p6 = pneg %p3312_p9 }
  0x5c   : > { %p3318_p11 = pnand %p3316_p8, %p3313_p6 }
  0x5e   : > { %3321 = shalt.err (!%p3318_p11)
}
  0x5f   : > { %s3322_s20 = scalar_lea.vmem %s282_s22, 256  ;;  %p3330_p13 = scmp.lt.s32.totalorder %s282_s22, %s282_s22 }
  0x60   : > { %p3323_p5 = scmp.ne.s32.totalorder %s282_s22, %s3322_s20  ;;  %p3331_p3 = scmp.lt.s32.totalorder %s3322_s20, %s3322_s20 }
  0x62   : > { %p3325_p7 = pnand %p3323_p5, %p3627_p0  ;;  %p3332_p1 = por %p3331_p3, %p3330_p13 }
  0x64   : > { %p3326_p10 = pneg %p3325_p7 }
  0x66   : > { %p3333_p2 = pnand %p3332_p1, %p3326_p10 }
  0x68   : > { %3336 = shalt.err (!%p3333_p2)
}
  0x69   : > { %s3505_s18 = smov 128   ;;  %s3506_s26 = smov 8  }
  0x6a   : > { %3029 = dma.hbm_to_vmem [thread:$0]  (!%p3611_p12), %s4569_s4, 256, %s282_s22, [#allocation13], %s3505_s18, %s3505_s18, %s3506_s26  }
  0x6b   : > { %s3715_s23 = sadd.s32 1, %s3497_s30   ;;  %s35_s25 = sadd.s32 1, %s3493_s29 }
  0x6c   : > { %s32_s24 = ssub.s32 %s3497_s30, %s3715_s23  ;;  %p42_p4 = scmp.ne.s32.totalorder %s3493_s29, %s3489_s28 }
  0x6d   : > { %p33_p0 = scmp.eq.s32.totalorder %s32_s24, 0  ;;  %p43_p9 = scmp.eq.s32.totalorder %s3497_s30, 0 }
  0x6e   : > { %p4704_p8 = scmp.eq.s32.totalorder %s3580_s9, 1  ;;  %p3042_p5 = scmp.lt.s32.totalorder %s3497_s30, 2 }
  0x6f   : > { %s3724_s10 = scalar_select %p33_p0, %s3493_s29, %s35_s25  }
  0x70   : > { %p44_p6 = por %p43_p9, %p42_p4  ;;  %p3728_p11 = por %p4704_p8, %p42_p4 }
  0x71   : > { %s298_s16 = sand.u32 1, %s3493_s29   ;;  %s2219_s22 = sshll.u32 %s3497_s30, 11 }
  0x72   : > { %s2156_s17 = sshll.u32 %s298_s16, 7  ;;  %s3738_s18 = scalar_lea.hbm %s4565_s0, %s2219_s22 }
  0x73   : > { %s302_s26 = scalar_lea.vmem [#allocation6], %s2156_s17  ;;  %p3742_p12 = pnand %p3042_p5, %p44_p6 }
  0x74   : > { %s310_s27 = sshll.u32 %s302_s26, 4  ;;  %s3746_s24 = scalar_lea.sflag [#allocation7], %s298_s16  ;;  %s3740_s27 = int_to_ptr.vmem [resolvable:$true] %s310_s27 }
  0x75   : > { %s3337_s25 = scalar_lea.hbm %s3738_s18, 2048  ;;  %p3339_p10 = pneg %p3742_p12 }
  0x76   : > { %p3338_p7 = scmp.ne.s32.totalorder %s3738_s18, %s3337_s25  ;;  %s3342_s15 = scalar_lea.hbm %s4565_s0, 4096 }
  0x77   : > { %p3343_p1 = scmp.lt.u32.totalorder %s3738_s18, %s4565_s0  ;;  %p3344_p2 = scmp.lt.u32.totalorder %s3342_s15, %s3337_s25 }
  0x78   : > { %p3340_p13 = pnand %p3339_p10, %p3338_p7  ;;  %p3346_p4 = scmp.lt.u32.totalorder %s3337_s25, %s3738_s18 }
  0x79   : > { %p3345_p0 = por %p3344_p2, %p3343_p1 }
  0x7a   : > { %p3341_p3 = pneg %p3340_p13 }
  0x7b   : > { %p3347_p9 = por %p3346_p4, %p3345_p0 }
  0x7d   : > { %p3348_p6 = pnand %p3347_p9, %p3341_p3 }
  0x7f   : > { %3351 = shalt.err (!%p3348_p6)
}
  0x80   : > { %s3352_s16 = scalar_lea.vmem %s3740_s27, 2048  ;;  %s3507_s17 = smov [#allocation6]  }
  0x81   : > { %p3353_p8 = scmp.ne.s32.totalorder %s3740_s27, %s3352_s16  ;;  %s3357_s22 = sshll.u32 %s3507_s17, 4  ;;  %s3358_s22 = int_to_ptr.vmem [resolvable:$false] %s3357_s22 }
  0x82   : > { %s3359_s20 = scalar_lea.vmem %s3358_s22, 4096  ;;  %p3360_p13 = scmp.lt.s32.totalorder %s3740_s27, %s3358_s22 }
  0x83   : > { %p3355_p5 = pnand %p3353_p8, %p3339_p10  ;;  %p3361_p1 = scmp.lt.s32.totalorder %s3359_s20, %s3352_s16 }
  0x85   : > { %p3356_p7 = pneg %p3355_p5  ;;  %p3362_p2 = por %p3361_p1, %p3360_p13 }
  0x87   : > { %p3363_p0 = pnand %p3362_p2, %p3356_p7 }
  0x89   : > { %3366 = shalt.err (!%p3363_p0)
}
  0x8a   : > { %3033 = dma.hbm_to_vmem [thread:$0]  (!%p3742_p12), %s3738_s18, 2048, %s3740_s27, %s3746_s24, %s3502_s19, %s3502_s19, %s3503_s21  }
  0x8b   : > { %p4707_p10 = scmp.ne.s32.totalorder %s4701_s13, 0 }
  0x8d   : > { %322 = sbr.rel (%p4707_p10) target bundleno = 1667 (0x683), region = 44 }
  0x94   : > { %s3780_s25 = sand.u32 1, %s3489_s28   ;;  %p4708_p3 = scmp.ne.s32.totalorder %s4698_s11, 0 }
  0x95   : > { %s2161_s15 = sshll.u32 %s3780_s25, 7  ;;  %s325_s26 = scalar_lea.sflag [#allocation7], %s3780_s25 }
  0x96   : > { %s3784_s16 = scalar_lea.vmem [#allocation6], %s2161_s15 }
  0x97   : > { %3464 = dma.done.wait (%p4708_p3), %s325_s26, 2048  }
  0x98   : > { %3466 = vsyncadd (%p4708_p3), %s325_s26, 4294965248  ;;  %p4709_p12 = scmp.eq.s32.totalorder %s3580_s9, 0 }
  0x9a   : > { %3468 = dma.done.wait (%p4709_p12), [#allocation10], 24576   ;;  %p4710_p4 = pmov %p4709_p12 }
  0x9c   : > { %3470 = vsyncadd (%p4710_p4), [#allocation10], 4294942720  ;;  %p4711_p9 = pmov %p4710_p4 }
  0x9d   : > { %p4712_p6 = pmov %p4710_p4 }
  0x9e   : > { %3472 = dma.done.wait (%p4711_p9), [#allocation13], 768  }
  0x9f   : > { %3474 = vsyncadd (%p4712_p6), [#allocation13], 4294966528  ;;  %s2166_s13 = sshll.u32 %s3780_s25, 5  ;;  %p4713_p8 = scmp.ne.s32.totalorder %s3580_s9, 0 }
  0xa0   : > { %s3799_s19 = scalar_lea.vmem [#allocation15], %s2166_s13  ;;  %v383_v0 = vld [vmem:[#allocation14] sm:$0xff] (!%p4713_p8)  ;;  %v388_v2 = vld [vmem:[#allocation14 + $0x8] sm:$0xff] (!%p4713_p8) }
  0xa1   : > { %382 = sbr.rel (%p4713_p8) target bundleno = 168 (0xa8), region = 68  ;;  %v385_v1 = vld [vmem:[%s4570_s5] sm:$0xff] (!%p4713_p8)  ;;  %384 = vst [vmem:[#allocation2] sm:$0xff] (!%p4713_p8), %v383_v0  ;;  %389 = vst [vmem:[#allocation4] sm:$0xff] (!%p4713_p8), %v388_v2  ;;  %v2168_v3 = vld [vmem:[%s4570_s5 + $0x8] sm:$0xff] (!%p4713_p8) }
  0xa2   : > { %386 = vst [vmem:[#allocation3] sm:$0xff] (!%p4713_p8), %v385_v1  ;;  %392 = vst [vmem:[#allocation5] sm:$0xff] (!%p4713_p8), %v2168_v3 }
  0xa8 PF: > { %v398_v4 = vld [vmem:[#allocation9 + $0x8] sm:$0xff]  ;;  %v397_v6 = vld [vmem:[#allocation9] sm:$0xff]  ;;  %v4579_v11 = vmov 0.0   ;;  %v400_v23 = vld [vmem:[#allocation9 + $0x18] sm:$0xff]  ;;  %p2208_p5 = scmp.ne.s32.totalorder %s3580_s9, 1 }
  0xa9   : > { %v402_v5 = vld [vmem:[#allocation9 + $0x28] sm:$0xff]  ;;  %v401_v8 = vld [vmem:[#allocation9 + $0x20] sm:$0xff]  ;;  %661 = vmatprep.mubr.f32.mxu0 %v4579_v11  ;;  %732 = vmatprep.mubr.f32.mxu1 %v4579_v11  ;;  %v404_v24 = vld [vmem:[#allocation9 + $0x38] sm:$0xff] }
  0xaa   : > { %v3809_v7 = vpack.c.bf16 %v402_v5, %v398_v4  ;;  %v406_v9 = vld [vmem:[#allocation9 + $0x48] sm:$0xff]  ;;  %v3813_v12 = vpack.c.bf16 %v401_v8, %v397_v6  ;;  %v405_v14 = vld [vmem:[#allocation9 + $0x40] sm:$0xff]  ;;  %v3824_v26 = vpack.c.bf16 %v404_v24, %v400_v23  ;;  %v399_v27 = vld [vmem:[#allocation9 + $0x10] sm:$0xff] }
  0xab   : > { %v410_v10 = vld [vmem:[#allocation9 + $0x68] sm:$0xff]  ;;  %v409_v15 = vld [vmem:[#allocation9 + $0x60] sm:$0xff]  ;;  %v403_v28 = vld [vmem:[#allocation9 + $0x30] sm:$0xff] }
  0xac   : > { %4714 = vst [vmem:[#allocation26_spill] sm:$0xff] %v3809_v7  ;;  %v3815_v13 = vpack.c.bf16 %v410_v10, %v406_v9  ;;  %v414_v16 = vld [vmem:[#allocation9 + $0x88] sm:$0xff]  ;;  %2222 = vmatprep.subr.bf16.mxu0 %v3809_v7  ;;  %v3819_v18 = vpack.c.bf16 %v409_v15, %v405_v14  ;;  %v413_v19 = vld [vmem:[#allocation9 + $0x80] sm:$0xff]  ;;  %4715 = vst [vmem:[#allocation27_spill] sm:$0xff] %v3824_v26  ;;  %v3826_v29 = vpack.c.bf16 %v403_v28, %v399_v27 }
  0xad   : > { %v418_v17 = vld [vmem:[#allocation9 + $0xa8] sm:$0xff]  ;;  %2224 = vmatpush1.bf16.msra.mxu0 %v3813_v12  ;;  %v417_v20 = vld [vmem:[#allocation9 + $0xa0] sm:$0xff]  ;;  %2254 = vmatprep.subr.bf16.mxu1 %v3824_v26  ;;  %v408_v31 = vld [vmem:[#allocation9 + $0x58] sm:$0xff] }
  0xae   : > { %2226 = vmatprep.subr.bf16.mxu0 %v3815_v13  ;;  %v3822_v21 = vpack.c.bf16 %v418_v17, %v414_v16  ;;  %v422_v22 = vld [vmem:[#allocation9 + $0xc8] sm:$0xff]  ;;  %v3829_v30 = vpack.c.bf16 %v417_v20, %v413_v19  ;;  %v412_v32 = vld [vmem:[#allocation9 + $0x78] sm:$0xff]  ;;  %v407_v33 = vld [vmem:[#allocation9 + $0x50] sm:$0xff]  ;;  %2256 = vmatpush1.bf16.msra.mxu1 %v3826_v29 }
  0xaf   : > { %v426_v25 = vld [vmem:[#allocation9 + $0xe8] sm:$0xff]  ;;  %v421_v35 = vld [vmem:[#allocation9 + $0xc0] sm:$0xff]  ;;  %v3836_v37 = vpack.c.bf16 %v412_v32, %v408_v31  ;;  %v411_v38 = vld [vmem:[#allocation9 + $0x70] sm:$0xff] }
  0xb0   : > { %v3833_v34 = vpack.c.bf16 %v426_v25, %v422_v22  ;;  %v425_v36 = vld [vmem:[#allocation9 + $0xe0] sm:$0xff]  ;;  %v430_v39 = vld [vmem:[#allocation9 + $0x108] sm:$0xff]  ;;  %v3838_v41 = vpack.c.bf16 %v411_v38, %v407_v33  ;;  %v416_v42 = vld [vmem:[#allocation9 + $0x98] sm:$0xff] }
  0xb1   : > { %2228 = vmatpush1.bf16.msra.mxu0 %v3819_v18  ;;  %v434_v40 = vld [vmem:[#allocation9 + $0x128] sm:$0xff]  ;;  %2258 = vmatprep.subr.bf16.mxu1 %v3836_v37  ;;  %v420_v43 = vld [vmem:[#allocation9 + $0xb8] sm:$0xff]  ;;  %v415_v44 = vld [vmem:[#allocation9 + $0x90] sm:$0xff]  ;;  %v3842_v46 = vpack.c.bf16 %v425_v36, %v421_v35 }
  0xb2   : > { %2230 = vmatprep.subr.bf16.mxu0 %v3822_v21  ;;  %v419_v45 = vld [vmem:[#allocation9 + $0xb0] sm:$0xff]  ;;  %v429_v47 = vld [vmem:[#allocation9 + $0x100] sm:$0xff]  ;;  %v3844_v49 = vpack.c.bf16 %v420_v43, %v416_v42  ;;  %v3847_v50 = vpack.c.bf16 %v434_v40, %v430_v39  ;;  %2260 = vmatpush1.bf16.msra.mxu1 %v3838_v41  ;;  %v438_v51 = vld [vmem:[#allocation9 + $0x148] sm:$0xff] }
  0xb3   : > { %v433_v48 = vld [vmem:[#allocation9 + $0x120] sm:$0xff]  ;;  %v3850_v52 = vpack.c.bf16 %v419_v45, %v415_v44  ;;  %v424_v53 = vld [vmem:[#allocation9 + $0xd8] sm:$0xff]  ;;  %v442_v55 = vld [vmem:[#allocation9 + $0x168] sm:$0xff] }
  0xb4   : > { %v428_v54 = vld [vmem:[#allocation9 + $0xf8] sm:$0xff]  ;;  %2262 = vmatprep.subr.bf16.mxu1 %v3844_v49  ;;  %v423_v57 = vld [vmem:[#allocation9 + $0xd0] sm:$0xff]  ;;  %v3856_v59 = vpack.c.bf16 %v433_v48, %v429_v47  ;;  %v3859_v62 = vpack.c.bf16 %v442_v55, %v438_v51  ;;  %v437_v63 = vld [vmem:[#allocation9 + $0x140] sm:$0xff] }
  0xb5   : > { %2232 = vmatpush1.bf16.msra.mxu0 %v3829_v30  ;;  %v3853_v56 = vpack.c.bf16 %v428_v54, %v424_v53  ;;  %v427_v58 = vld [vmem:[#allocation9 + $0xf0] sm:$0xff]  ;;  %v432_v60 = vld [vmem:[#allocation9 + $0x118] sm:$0xff]  ;;  %v441_v0 = vld [vmem:[#allocation9 + $0x160] sm:$0xff] }
  0xb6   : > { %2234 = vmatprep.subr.bf16.mxu0 %v3833_v34  ;;  %v436_v61 = vld [vmem:[#allocation9 + $0x138] sm:$0xff]  ;;  %2264 = vmatpush1.bf16.msra.mxu1 %v3850_v52  ;;  %v446_v1 = vld [vmem:[#allocation9 + $0x188] sm:$0xff]  ;;  %v3862_v2 = vpack.c.bf16 %v427_v58, %v423_v57  ;;  %v431_v5 = vld [vmem:[#allocation9 + $0x110] sm:$0xff]  ;;  %v3868_v10 = vpack.c.bf16 %v441_v0, %v437_v63 }
  0xb7   : > { %v450_v3 = vld [vmem:[#allocation9 + $0x1a8] sm:$0xff]  ;;  %2266 = vmatprep.subr.bf16.mxu1 %v3853_v56  ;;  %v3865_v4 = vpack.c.bf16 %v436_v61, %v432_v60  ;;  %v435_v6 = vld [vmem:[#allocation9 + $0x130] sm:$0xff]  ;;  %v440_v8 = vld [vmem:[#allocation9 + $0x158] sm:$0xff] }
  0xb8   : > { %v444_v9 = vld [vmem:[#allocation9 + $0x178] sm:$0xff]  ;;  %v3871_v14 = vpack.c.bf16 %v450_v3, %v446_v1  ;;  %v445_v15 = vld [vmem:[#allocation9 + $0x180] sm:$0xff]  ;;  %v454_v17 = vld [vmem:[#allocation9 + $0x1c8] sm:$0xff]  ;;  %v3874_v19 = vpack.c.bf16 %v435_v6, %v431_v5 }
  0xb9   : > { %2236 = vmatpush1.bf16.msra.mxu0 %v3842_v46  ;;  %v449_v16 = vld [vmem:[#allocation9 + $0x1a0] sm:$0xff]  ;;  %v458_v20 = vld [vmem:[#allocation9 + $0x1e8] sm:$0xff]  ;;  %v3877_v22 = vpack.c.bf16 %v444_v9, %v440_v8  ;;  %v439_v23 = vld [vmem:[#allocation9 + $0x150] sm:$0xff] }
  0xba   : > { %2238 = vmatprep.subr.bf16.mxu0 %v3847_v50  ;;  %2268 = vmatpush1.bf16.msra.mxu1 %v3862_v2  ;;  %v443_v24 = vld [vmem:[#allocation9 + $0x170] sm:$0xff]  ;;  %v448_v25 = vld [vmem:[#allocation9 + $0x198] sm:$0xff]  ;;  %v3880_v28 = vpack.c.bf16 %v449_v16, %v445_v15  ;;  %v3883_v31 = vpack.c.bf16 %v458_v20, %v454_v17  ;;  %v453_v32 = vld [vmem:[#allocation9 + $0x1c0] sm:$0xff] }
  0xbb   : > { %2270 = vmatprep.subr.bf16.mxu1 %v3865_v4  ;;  %v452_v27 = vld [vmem:[#allocation9 + $0x1b8] sm:$0xff]  ;;  %v457_v33 = vld [vmem:[#allocation9 + $0x1e0] sm:$0xff]  ;;  %v3886_v35 = vpack.c.bf16 %v443_v24, %v439_v23  ;;  %v447_v36 = vld [vmem:[#allocation9 + $0x190] sm:$0xff] }
  0xbc   : > { %v3889_v38 = vpack.c.bf16 %v452_v27, %v448_v25  ;;  %v451_v39 = vld [vmem:[#allocation9 + $0x1b0] sm:$0xff]  ;;  %v462_v40 = vld [vmem:[#allocation11 + $0x8] sm:$0xff]  ;;  %v456_v43 = vld [vmem:[#allocation9 + $0x1d8] sm:$0xff]  ;;  %v3892_v45 = vpack.c.bf16 %v457_v33, %v453_v32 }
  0xbd   : > { %2240 = vmatpush1.bf16.msra.mxu0 %v3856_v59  ;;  %v466_v42 = vld [vmem:[#allocation11 + $0x28] sm:$0xff]  ;;  %v460_v44 = vld [vmem:[#allocation9 + $0x1f8] sm:$0xff]  ;;  %v3896_v47 = vpack.c.bf16 %v451_v39, %v447_v36  ;;  %v455_v48 = vld [vmem:[#allocation9 + $0x1d0] sm:$0xff] }
  0xbe   : > { %2242 = vmatprep.subr.bf16.mxu0 %v3859_v62  ;;  %2272 = vmatpush1.bf16.msra.mxu1 %v3874_v19  ;;  %v3898_v51 = vpack.c.bf16 %v466_v42, %v462_v40  ;;  %v461_v53 = vld [vmem:[#allocation11] sm:$0xff]  ;;  %v3901_v55 = vpack.c.bf16 %v460_v44, %v456_v43  ;;  %v459_v57 = vld [vmem:[#allocation9 + $0x1f0] sm:$0xff]  ;;  %v470_v58 = vld [vmem:[#allocation11 + $0x48] sm:$0xff] }
  0xbf   : > { %2274 = vmatprep.subr.bf16.mxu1 %v3877_v22  ;;  %v465_v54 = vld [vmem:[#allocation11 + $0x20] sm:$0xff]  ;;  %v474_v60 = vld [vmem:[#allocation11 + $0x68] sm:$0xff]  ;;  %v464_v61 = vld [vmem:[#allocation11 + $0x18] sm:$0xff]  ;;  %v3907_v3 = vpack.c.bf16 %v459_v57, %v455_v48 }
  0xc0   : > { %v468_v63 = vld [vmem:[#allocation11 + $0x38] sm:$0xff]  ;;  %v393_v0 = vld [vmem:[#allocation2] sm:$0xff]  ;;  %v3904_v1 = vpack.c.bf16 %v465_v54, %v461_v53  ;;  %v463_v5 = vld [vmem:[#allocation11 + $0x10] sm:$0xff]  ;;  %v3910_v6 = vpack.c.bf16 %v474_v60, %v470_v58 }
  0xc1   : > { %2244 = vmatpush1.bf16.msra.mxu0 %v3868_v10  ;;  %v469_v8 = vld [vmem:[#allocation11 + $0x40] sm:$0xff]  ;;  %v3913_v15 = vpack.c.bf16 %v468_v63, %v464_v61  ;;  %v467_v16 = vld [vmem:[#allocation11 + $0x30] sm:$0xff]  ;;  %v478_v17 = vld [vmem:[#allocation11 + $0x88] sm:$0xff] }
  0xc2   : > { %2246 = vmatprep.subr.bf16.mxu0 %v3871_v14  ;;  %2276 = vmatpush1.bf16.msra.mxu1 %v3886_v35  ;;  %v473_v9 = vld [vmem:[#allocation11 + $0x60] sm:$0xff]  ;;  %v482_v20 = vld [vmem:[#allocation11 + $0xa8] sm:$0xff]  ;;  %v472_v23 = vld [vmem:[#allocation11 + $0x58] sm:$0xff]  ;;  %v3919_v27 = vpack.c.bf16 %v467_v16, %v463_v5 }
  0xc3   : > { %2278 = vmatprep.subr.bf16.mxu1 %v3889_v38  ;;  %v476_v24 = vld [vmem:[#allocation11 + $0x78] sm:$0xff]  ;;  %v3916_v25 = vpack.c.bf16 %v473_v9, %v469_v8  ;;  %v471_v32 = vld [vmem:[#allocation11 + $0x50] sm:$0xff]  ;;  %v3922_v33 = vpack.c.bf16 %v482_v20, %v478_v17  ;;  %v477_v36 = vld [vmem:[#allocation11 + $0x80] sm:$0xff] }
  0xc4   : > { %v481_v39 = vld [vmem:[#allocation11 + $0xa0] sm:$0xff]  ;;  %v3925_v40 = vpack.c.bf16 %v476_v24, %v472_v23  ;;  %v475_v42 = vld [vmem:[#allocation11 + $0x70] sm:$0xff]  ;;  %v486_v43 = vld [vmem:[#allocation11 + $0xc8] sm:$0xff] }
  0xc5   : > { %2248 = vmatpush1.bf16.msra.mxu0 %v3880_v28  ;;  %v490_v44 = vld [vmem:[#allocation11 + $0xe8] sm:$0xff]  ;;  %v480_v48 = vld [vmem:[#allocation11 + $0x98] sm:$0xff]  ;;  %v3928_v54 = vpack.c.bf16 %v481_v39, %v477_v36  ;;  %v3931_v57 = vpack.c.bf16 %v475_v42, %v471_v32  ;;  %v479_v58 = vld [vmem:[#allocation11 + $0x90] sm:$0xff] }
  0xc6   : > { %2250 = vmatprep.subr.bf16.mxu0 %v3883_v31  ;;  %2280 = vmatpush1.bf16.msra.mxu1 %v3896_v47  ;;  %v484_v53 = vld [vmem:[#allocation11 + $0xb8] sm:$0xff]  ;;  %v3934_v60 = vpack.c.bf16 %v490_v44, %v486_v43  ;;  %v485_v61 = vld [vmem:[#allocation11 + $0xc0] sm:$0xff]  ;;  %v494_v8 = vld [vmem:[#allocation11 + $0x108] sm:$0xff] }
  0xc7   : > { %2282 = vmatprep.subr.bf16.mxu1 %v3901_v55  ;;  %v489_v63 = vld [vmem:[#allocation11 + $0xe0] sm:$0xff]  ;;  %v3937_v5 = vpack.c.bf16 %v484_v53, %v480_v48  ;;  %v498_v9 = vld [vmem:[#allocation11 + $0x128] sm:$0xff]  ;;  %v488_v16 = vld [vmem:[#allocation11 + $0xd8] sm:$0xff] }
  0xc8   : > { %4716 = vst [vmem:[#allocation28_spill] sm:$0xff] %v3934_v60  ;;  %v492_v17 = vld [vmem:[#allocation11 + $0xf8] sm:$0xff]  ;;  %v3940_v20 = vpack.c.bf16 %v489_v63, %v485_v61  ;;  %v3946_v24 = vpack.c.bf16 %v498_v9, %v494_v8  ;;  %v493_v32 = vld [vmem:[#allocation11 + $0x100] sm:$0xff]  ;;  %v487_v42 = vld [vmem:[#allocation11 + $0xd0] sm:$0xff] }
  0xc9   : > { %2252 = vmatpush1.bf16.msra.mxu0 %v3892_v45  ;;  %v497_v36 = vld [vmem:[#allocation11 + $0x120] sm:$0xff]  ;;  %v3949_v39 = vpack.c.bf16 %v492_v17, %v488_v16  ;;  %v491_v43 = vld [vmem:[#allocation11 + $0xf0] sm:$0xff]  ;;  %v496_v44 = vld [vmem:[#allocation11 + $0x118] sm:$0xff] }
  0xca   : > { %2286 = vmatprep.subr.bf16.mxu0 %v3898_v51  ;;  %2284 = vmatpush1.bf16.msra.mxu1 %v3907_v3  ;;  %4717 = vst [vmem:[#allocation29_spill] sm:$0xff] %v3940_v20  ;;  %4718 = vst [vmem:[#allocation30_spill] sm:$0xff] %v3946_v24  ;;  %v500_v48 = vld [vmem:[#allocation11 + $0x138] sm:$0xff]  ;;  %v3952_v53 = vpack.c.bf16 %v497_v36, %v493_v32  ;;  %v495_v63 = vld [vmem:[#allocation11 + $0x110] sm:$0xff] }
  0xcb   : > { %2350 = vmatprep.subr.bf16.mxu1 %v3913_v15  ;;  %4719 = vst [vmem:[#allocation31_spill] sm:$0xff] %v3949_v39  ;;  %v3959_v61 = vpack.c.bf16 %v500_v48, %v496_v44  ;;  %v502_v9 = vld [vmem:[#allocation11 + $0x148] sm:$0xff]  ;;  %v504_v17 = vld [vmem:[#allocation11 + $0x158] sm:$0xff]  ;;  %v503_v11 = vld [vmem:[#allocation11 + $0x150] sm:$0xff] }
  0xcc   : > { %662 = vmatmul.mubr.f32.vlgmr.msra.gmra.mrb[0].mxu0 %v393_v0  ;;  %4720 = vst [vmem:[#allocation32_spill] sm:$0xff] %v3952_v53  ;;  %v506_v16 = vld [vmem:[#allocation11 + $0x168] sm:$0xff]  ;;  %v508_v36 = vld [vmem:[#allocation11 + $0x178] sm:$0xff] }
  0xcd   : > { %2288 = vmatpush1.bf16.msra.mxu0 %v3904_v1  ;;  %733 = vmatmul.mubr.f32.vlgmr.msra.gmra.mrb[0].mxu1 %v393_v0  ;;  %v483_v0 = vld [vmem:[#allocation11 + $0xb0] sm:$0xff]  ;;  %4722 = vst [vmem:[#allocation34_spill] sm:$0xff] %v3959_v61  ;;  %v3967_v32 = vpack.c.bf16 %v506_v16, %v502_v9  ;;  %v3969_v44 = vpack.c.bf16 %v508_v36, %v504_v17  ;;  %v514_v9 = vld [vmem:[#allocation11 + $0x1a8] sm:$0xff]  ;;  %v512_v16 = vld [vmem:[#allocation11 + $0x198] sm:$0xff] }
  0xce   : > { %2290 = vmatprep.subr.bf16.mxu0 %v3910_v6  ;;  %2352 = vmatpush1.bf16.msra.mxu1 %v3919_v27  ;;  %v3943_v23 = vpack.c.bf16 %v483_v0, %v479_v58  ;;  %v3955_v58 = vpack.c.bf16 %v491_v43, %v487_v42  ;;  %v499_v0 = vld [vmem:[#allocation11 + $0x130] sm:$0xff]  ;;  %v501_v42 = vld [vmem:[#allocation11 + $0x140] sm:$0xff]  ;;  %v516_v17 = vld [vmem:[#allocation11 + $0x1b8] sm:$0xff] }
  0xcf   : > { %2354 = vmatprep.subr.bf16.mxu1 %v3925_v40  ;;  %v3963_v8 = vpack.c.bf16 %v499_v0, %v495_v63  ;;  %4724 = vst [vmem:[#allocation36_spill] sm:$0xff] %v3967_v32  ;;  %v505_v43 = vld [vmem:[#allocation11 + $0x160] sm:$0xff]  ;;  %4725 = vst [vmem:[#allocation37_spill] sm:$0xff] %v3969_v44  ;;  %v510_v0 = vld [vmem:[#allocation11 + $0x188] sm:$0xff] }
  0xd0   : > { %4721 = vst [vmem:[#allocation33_spill] sm:$0xff] %v3955_v58  ;;  %v3971_v48 = vpack.c.bf16 %v505_v43, %v501_v42  ;;  %v509_v36 = vld [vmem:[#allocation11 + $0x180] sm:$0xff]  ;;  %v3981_v43 = vpack.c.bf16 %v516_v17, %v512_v16  ;;  %v524_v16 = vld [vmem:[#allocation11 + $0x1f8] sm:$0xff] }
  0xd1   : > { %2292 = vmatpush1.bf16.msra.mxu0 %v3916_v25  ;;  %4723 = vst [vmem:[#allocation35_spill] sm:$0xff] %v3963_v8  ;;  %v513_v42 = vld [vmem:[#allocation11 + $0x1a0] sm:$0xff] }
  0xd2   : > { %2294 = vmatprep.subr.bf16.mxu0 %v3922_v33  ;;  %2356 = vmatpush1.bf16.msra.mxu1 %v3931_v57  ;;  %4726 = vst [vmem:[#allocation38_spill] sm:$0xff] %v3971_v48  ;;  %4729 = vst [vmem:[#allocation41_spill] sm:$0xff] %v3981_v43  ;;  %v517_v17 = vld [vmem:[#allocation11 + $0x1c0] sm:$0xff] }
  0xd3   : > { %2358 = vmatprep.subr.bf16.mxu1 %v3937_v5 }
  0xd5   : > { %2296 = vmatpush1.bf16.msra.mxu0 %v3928_v54 }
  0xd6   : > { %2298 = vmatprep.subr.bf16.mxu0 %v3934_v60  ;;  %2360 = vmatpush1.bf16.msra.mxu1 %v3943_v23 }
  0xd7   : > { %2362 = vmatprep.subr.bf16.mxu1 %v3949_v39 }
  0xd9   : > { %2300 = vmatpush1.bf16.msra.mxu0 %v3940_v20 }
  0xda   : > { %2302 = vmatprep.subr.bf16.mxu0 %v3946_v24  ;;  %2364 = vmatpush1.bf16.msra.mxu1 %v3955_v58  ;;  %v578_v24 = vld [vmem:[#allocation11 + $0x3a8] sm:$0xff]  ;;  %v573_v58 = vld [vmem:[#allocation11 + $0x380] sm:$0xff] }
  0xdb   : > { %2366 = vmatprep.subr.bf16.mxu1 %v3959_v61  ;;  %v3983_v61 = vpack.c.bf16 %v513_v42, %v509_v36  ;;  %v521_v36 = vld [vmem:[#allocation11 + $0x1e0] sm:$0xff] }
  0xdd   : > { %2304 = vmatpush1.bf16.msra.mxu0 %v3952_v53  ;;  %v507_v53 = vld [vmem:[#allocation11 + $0x170] sm:$0xff]  ;;  %4730 = vst [vmem:[#allocation42_spill] sm:$0xff] %v3983_v61 }
  0xde   : > { %2368 = vmatpush1.bf16.msra.mxu1 %v3963_v8  ;;  %2306 = vmatprep.subr.bf16.mxu0 %v3967_v32  ;;  %v3974_v63 = vpack.c.bf16 %v507_v53, %v503_v11  ;;  %v3979_v8 = vpack.c.bf16 %v514_v9, %v510_v0  ;;  %v511_v11 = vld [vmem:[#allocation11 + $0x190] sm:$0xff]  ;;  %v522_v0 = vld [vmem:[#allocation11 + $0x1e8] sm:$0xff]  ;;  %v520_v9 = vld [vmem:[#allocation11 + $0x1d8] sm:$0xff]  ;;  %v3995_v32 = vpack.c.bf16 %v521_v36, %v517_v17 }
  0xdf   : > { %2370 = vmatprep.subr.bf16.mxu1 %v3969_v44  ;;  %v515_v53 = vld [vmem:[#allocation11 + $0x1b0] sm:$0xff]  ;;  %v3993_v42 = vpack.c.bf16 %v524_v16, %v520_v9  ;;  %v532_v9 = vld [vmem:[#allocation11 + $0x238] sm:$0xff]  ;;  %v525_v16 = vld [vmem:[#allocation11 + $0x200] sm:$0xff] }
  0xe0   : > { %4727 = vst [vmem:[#allocation39_spill] sm:$0xff] %v3974_v63  ;;  %4728 = vst [vmem:[#allocation40_spill] sm:$0xff] %v3979_v8  ;;  %v3986_v44 = vpack.c.bf16 %v515_v53, %v511_v11  ;;  %v519_v11 = vld [vmem:[#allocation11 + $0x1d0] sm:$0xff]  ;;  %v529_v17 = vld [vmem:[#allocation11 + $0x220] sm:$0xff] }
  0xe1   : > { %2308 = vmatpush1.bf16.msra.mxu0 %v3971_v48  ;;  %4733 = vst [vmem:[#allocation45_spill] sm:$0xff] %v3993_v42  ;;  %4734 = vst [vmem:[#allocation46_spill] sm:$0xff] %v3995_v32  ;;  %v523_v53 = vld [vmem:[#allocation11 + $0x1f0] sm:$0xff] }
  0xe2   : > { %2372 = vmatpush1.bf16.msra.mxu1 %v3974_v63  ;;  %2310 = vmatprep.subr.bf16.mxu0 %v3979_v8  ;;  %4731 = vst [vmem:[#allocation43_spill] sm:$0xff] %v3986_v44  ;;  %v518_v63 = vld [vmem:[#allocation11 + $0x1c8] sm:$0xff]  ;;  %v4007_v8 = vpack.c.bf16 %v529_v17, %v525_v16  ;;  %v533_v16 = vld [vmem:[#allocation11 + $0x240] sm:$0xff] }
  0xe3   : > { %2374 = vmatprep.subr.bf16.mxu1 %v3981_v43  ;;  %v3991_v48 = vpack.c.bf16 %v522_v0, %v518_v63  ;;  %v3998_v43 = vpack.c.bf16 %v523_v53, %v519_v11  ;;  %v530_v63 = vld [vmem:[#allocation11 + $0x228] sm:$0xff]  ;;  %v528_v0 = vld [vmem:[#allocation11 + $0x218] sm:$0xff]  ;;  %v527_v11 = vld [vmem:[#allocation11 + $0x210] sm:$0xff] }
  0xe4   : > { %v4005_v36 = vpack.c.bf16 %v532_v9, %v528_v0  ;;  %4738 = vst [vmem:[#allocation50_spill] sm:$0xff] %v4007_v8  ;;  %v531_v53 = vld [vmem:[#allocation11 + $0x230] sm:$0xff]  ;;  %v537_v17 = vld [vmem:[#allocation11 + $0x260] sm:$0xff] }
  0xe5   : > { %2312 = vmatpush1.bf16.msra.mxu0 %v3983_v61  ;;  %4732 = vst [vmem:[#allocation44_spill] sm:$0xff] %v3991_v48  ;;  %4735 = vst [vmem:[#allocation47_spill] sm:$0xff] %v3998_v43 }
  0xe6   : > { %2376 = vmatpush1.bf16.msra.mxu1 %v3986_v44  ;;  %2314 = vmatprep.subr.bf16.mxu0 %v3991_v48  ;;  %v526_v44 = vld [vmem:[#allocation11 + $0x208] sm:$0xff]  ;;  %4737 = vst [vmem:[#allocation49_spill] sm:$0xff] %v4005_v36  ;;  %v535_v48 = vld [vmem:[#allocation11 + $0x250] sm:$0xff] }
  0xe7   : > { %2378 = vmatprep.subr.bf16.mxu1 %v3993_v42  ;;  %v4003_v61 = vpack.c.bf16 %v530_v63, %v526_v44  ;;  %v4010_v42 = vpack.c.bf16 %v531_v53, %v527_v11  ;;  %v538_v44 = vld [vmem:[#allocation11 + $0x268] sm:$0xff]  ;;  %v536_v63 = vld [vmem:[#allocation11 + $0x258] sm:$0xff]  ;;  %v539_v11 = vld [vmem:[#allocation11 + $0x270] sm:$0xff] }
  0xe8   : > { %v4023_v53 = vpack.c.bf16 %v539_v11, %v535_v48  ;;  %v550_v11 = vld [vmem:[#allocation11 + $0x2c8] sm:$0xff] }
  0xe9   : > { %2316 = vmatpush1.bf16.msra.mxu0 %v3995_v32  ;;  %4736 = vst [vmem:[#allocation48_spill] sm:$0xff] %v4003_v61  ;;  %4739 = vst [vmem:[#allocation51_spill] sm:$0xff] %v4010_v42  ;;  %v540_v32 = vld [vmem:[#allocation11 + $0x278] sm:$0xff] }
  0xea   : > { %2380 = vmatpush1.bf16.msra.mxu1 %v3998_v43  ;;  %2318 = vmatprep.subr.bf16.mxu0 %v4003_v61  ;;  %v534_v43 = vld [vmem:[#allocation11 + $0x248] sm:$0xff]  ;;  %v4017_v9 = vpack.c.bf16 %v540_v32, %v536_v63  ;;  %v4019_v61 = vpack.c.bf16 %v537_v17, %v533_v16  ;;  %4743 = vst [vmem:[#allocation55_spill] sm:$0xff] %v4023_v53  ;;  %v548_v32 = vld [vmem:[#allocation11 + $0x2b8] sm:$0xff]  ;;  %v545_v63 = vld [vmem:[#allocation11 + $0x2a0] sm:$0xff] }
  0xeb   : > { %2382 = vmatprep.subr.bf16.mxu1 %v4005_v36  ;;  %v4015_v0 = vpack.c.bf16 %v538_v44, %v534_v43  ;;  %v544_v36 = vld [vmem:[#allocation11 + $0x298] sm:$0xff]  ;;  %v541_v44 = vld [vmem:[#allocation11 + $0x280] sm:$0xff] }
  0xec   : > { %4741 = vst [vmem:[#allocation53_spill] sm:$0xff] %v4017_v9  ;;  %4742 = vst [vmem:[#allocation54_spill] sm:$0xff] %v4019_v61  ;;  %v4029_v16 = vpack.c.bf16 %v548_v32, %v544_v36  ;;  %v4031_v17 = vpack.c.bf16 %v545_v63, %v541_v44  ;;  %v549_v36 = vld [vmem:[#allocation11 + $0x2c0] sm:$0xff] }
  0xed   : > { %2320 = vmatpush1.bf16.msra.mxu0 %v4007_v8  ;;  %4740 = vst [vmem:[#allocation52_spill] sm:$0xff] %v4015_v0  ;;  %v546_v8 = vld [vmem:[#allocation11 + $0x2a8] sm:$0xff]  ;;  %v553_v32 = vld [vmem:[#allocation11 + $0x2e0] sm:$0xff] }
  0xee   : > { %2384 = vmatpush1.bf16.msra.mxu1 %v4010_v42  ;;  %2322 = vmatprep.subr.bf16.mxu0 %v4015_v0  ;;  %v542_v42 = vld [vmem:[#allocation11 + $0x288] sm:$0xff]  ;;  %4745 = vst [vmem:[#allocation57_spill] sm:$0xff] %v4029_v16  ;;  %4746 = vst [vmem:[#allocation58_spill] sm:$0xff] %v4031_v17  ;;  %v543_v0 = vld [vmem:[#allocation11 + $0x290] sm:$0xff]  ;;  %v4043_v63 = vpack.c.bf16 %v553_v32, %v549_v36 }
  0xef   : > { %2386 = vmatprep.subr.bf16.mxu1 %v4017_v9  ;;  %v4026_v43 = vpack.c.bf16 %v546_v8, %v542_v42  ;;  %v547_v9 = vld [vmem:[#allocation11 + $0x2b0] sm:$0xff]  ;;  %v554_v8 = vld [vmem:[#allocation11 + $0x2e8] sm:$0xff]  ;;  %v552_v42 = vld [vmem:[#allocation11 + $0x2d8] sm:$0xff] }
  0xf0   : > { %v4034_v48 = vpack.c.bf16 %v547_v9, %v543_v0  ;;  %4750 = vst [vmem:[#allocation62_spill] sm:$0xff] %v4043_v63  ;;  %v551_v0 = vld [vmem:[#allocation11 + $0x2d0] sm:$0xff] }
  0xf1   : > { %2324 = vmatpush1.bf16.msra.mxu0 %v4019_v61  ;;  %4744 = vst [vmem:[#allocation56_spill] sm:$0xff] %v4026_v43  ;;  %v4038_v61 = vpack.c.bf16 %v554_v8, %v550_v11  ;;  %v555_v9 = vld [vmem:[#allocation11 + $0x2f0] sm:$0xff]  ;;  %v562_v11 = vld [vmem:[#allocation11 + $0x328] sm:$0xff]  ;;  %v560_v8 = vld [vmem:[#allocation11 + $0x318] sm:$0xff] }
  0xf2   : > { %2388 = vmatpush1.bf16.msra.mxu1 %v4023_v53  ;;  %2326 = vmatprep.subr.bf16.mxu0 %v4026_v43  ;;  %4747 = vst [vmem:[#allocation59_spill] sm:$0xff] %v4034_v48  ;;  %v556_v53 = vld [vmem:[#allocation11 + $0x2f8] sm:$0xff] }
  0xf3   : > { %2390 = vmatprep.subr.bf16.mxu1 %v4029_v16  ;;  %4748 = vst [vmem:[#allocation60_spill] sm:$0xff] %v4038_v61  ;;  %v4041_v44 = vpack.c.bf16 %v556_v53, %v552_v42  ;;  %v4046_v16 = vpack.c.bf16 %v555_v9, %v551_v0  ;;  %v557_v53 = vld [vmem:[#allocation11 + $0x300] sm:$0xff]  ;;  %v559_v0 = vld [vmem:[#allocation11 + $0x310] sm:$0xff] }
  0xf4   : > { %v561_v42 = vld [vmem:[#allocation11 + $0x320] sm:$0xff]  ;;  %v563_v9 = vld [vmem:[#allocation11 + $0x330] sm:$0xff] }
  0xf5   : > { %2328 = vmatpush1.bf16.msra.mxu0 %v4031_v17  ;;  %4749 = vst [vmem:[#allocation61_spill] sm:$0xff] %v4041_v44  ;;  %4751 = vst [vmem:[#allocation63_spill] sm:$0xff] %v4046_v16  ;;  %v558_v17 = vld [vmem:[#allocation11 + $0x308] sm:$0xff]  ;;  %v4055_v32 = vpack.c.bf16 %v561_v42, %v557_v53 }
  0xf6   : > { %2392 = vmatpush1.bf16.msra.mxu1 %v4034_v48  ;;  %2330 = vmatprep.subr.bf16.mxu0 %v4038_v61  ;;  %v4050_v43 = vpack.c.bf16 %v562_v11, %v558_v17  ;;  %v564_v48 = vld [vmem:[#allocation11 + $0x338] sm:$0xff]  ;;  %v570_v17 = vld [vmem:[#allocation11 + $0x368] sm:$0xff] }
  0xf7   : > { %2394 = vmatprep.subr.bf16.mxu1 %v4041_v44  ;;  %v4053_v36 = vpack.c.bf16 %v564_v48, %v560_v8  ;;  %4754 = vst [vmem:[#allocation66_spill] sm:$0xff] %v4055_v32  ;;  %v4058_v44 = vpack.c.bf16 %v563_v9, %v559_v0  ;;  %v568_v11 = vld [vmem:[#allocation11 + $0x358] sm:$0xff]  ;;  %v565_v48 = vld [vmem:[#allocation11 + $0x340] sm:$0xff]  ;;  %v567_v0 = vld [vmem:[#allocation11 + $0x350] sm:$0xff] }
  0xf8   : > { %4752 = vst [vmem:[#allocation64_spill] sm:$0xff] %v4050_v43  ;;  %v569_v8 = vld [vmem:[#allocation11 + $0x360] sm:$0xff]  ;;  %v571_v9 = vld [vmem:[#allocation11 + $0x370] sm:$0xff] }
  0xf9   : > { %2332 = vmatpush1.bf16.msra.mxu0 %v4043_v63  ;;  %4753 = vst [vmem:[#allocation65_spill] sm:$0xff] %v4053_v36  ;;  %4755 = vst [vmem:[#allocation67_spill] sm:$0xff] %v4058_v44  ;;  %v566_v63 = vld [vmem:[#allocation11 + $0x348] sm:$0xff]  ;;  %v4067_v42 = vpack.c.bf16 %v569_v8, %v565_v48  ;;  %v575_v48 = vld [vmem:[#allocation11 + $0x390] sm:$0xff] }
  0xfa   : > { %2396 = vmatpush1.bf16.msra.mxu1 %v4046_v16  ;;  %2334 = vmatprep.subr.bf16.mxu0 %v4050_v43  ;;  %v4062_v61 = vpack.c.bf16 %v570_v17, %v566_v63  ;;  %v572_v16 = vld [vmem:[#allocation11 + $0x378] sm:$0xff]  ;;  %v574_v43 = vld [vmem:[#allocation11 + $0x388] sm:$0xff]  ;;  %v579_v8 = vld [vmem:[#allocation11 + $0x3b0] sm:$0xff] }
  0xfb   : > { %2398 = vmatprep.subr.bf16.mxu1 %v4053_v36  ;;  %v4065_v53 = vpack.c.bf16 %v572_v16, %v568_v11  ;;  %4758 = vst [vmem:[#allocation70_spill] sm:$0xff] %v4067_v42  ;;  %v4070_v36 = vpack.c.bf16 %v571_v9, %v567_v0  ;;  %v4073_v63 = vpack.c.bf16 %v578_v24, %v574_v43  ;;  %v580_v17 = vld [vmem:[#allocation11 + $0x3b8] sm:$0xff]  ;;  %v582_v0 = vld [vmem:[#allocation11 + $0x3c8] sm:$0xff] }
  0xfc   : > { %4756 = vst [vmem:[#allocation68_spill] sm:$0xff] %v4062_v61  ;;  %v4082_v9 = vpack.c.bf16 %v579_v8, %v575_v48  ;;  %v586_v24 = vld [vmem:[#allocation11 + $0x3e8] sm:$0xff]  ;;  %v584_v43 = vld [vmem:[#allocation11 + $0x3d8] sm:$0xff] }
  0xfd   : > { %2336 = vmatpush1.bf16.msra.mxu0 %v4055_v32  ;;  %4757 = vst [vmem:[#allocation69_spill] sm:$0xff] %v4065_v53  ;;  %4759 = vst [vmem:[#allocation71_spill] sm:$0xff] %v4070_v36  ;;  %v576_v32 = vld [vmem:[#allocation11 + $0x398] sm:$0xff] }
  0xfe   : > { %2400 = vmatpush1.bf16.msra.mxu1 %v4058_v44  ;;  %2338 = vmatprep.subr.bf16.mxu0 %v4062_v61  ;;  %4760 = vst [vmem:[#allocation72_spill] sm:$0xff] %v4073_v63  ;;  %v577_v44 = vld [vmem:[#allocation11 + $0x3a0] sm:$0xff]  ;;  %v4076_v16 = vpack.c.bf16 %v580_v17, %v576_v32  ;;  %4763 = vst [vmem:[#allocation75_spill] sm:$0xff] %v4082_v9  ;;  %v4085_v61 = vpack.c.bf16 %v586_v24, %v582_v0  ;;  %v583_v17 = vld [vmem:[#allocation11 + $0x3d0] sm:$0xff] }
  0xff   : > { %2402 = vmatprep.subr.bf16.mxu1 %v4065_v53  ;;  %v4078_v11 = vpack.c.bf16 %v577_v44, %v573_v58  ;;  %v588_v53 = vld [vmem:[#allocation11 + $0x3f8] sm:$0xff]  ;;  %v581_v58 = vld [vmem:[#allocation11 + $0x3c0] sm:$0xff]  ;;  %v594_v0 = vld [vmem:[%s3784_s16 + $0x8] sm:$0xff] }
 0x100   : > { %4761 = vst [vmem:[#allocation73_spill] sm:$0xff] %v4076_v16  ;;  %4764 = vst [vmem:[#allocation76_spill] sm:$0xff] %v4085_v61  ;;  %v4087_v32 = vpack.c.bf16 %v588_v53, %v584_v43  ;;  %v585_v44 = vld [vmem:[#allocation11 + $0x3e0] sm:$0xff] }
 0x101   : > { %2340 = vmatpush1.bf16.msra.mxu0 %v4067_v42  ;;  %4762 = vst [vmem:[#allocation74_spill] sm:$0xff] %v4078_v11  ;;  %v587_v42 = vld [vmem:[#allocation11 + $0x3f0] sm:$0xff]  ;;  %v4090_v48 = vpack.c.bf16 %v585_v44, %v581_v58  ;;  %v593_v53 = vld [vmem:[%s3784_s16] sm:$0xff] }
 0x102   : > { %2404 = vmatpush1.bf16.msra.mxu1 %v4070_v36  ;;  %2342 = vmatprep.subr.bf16.mxu0 %v4073_v63  ;;  %4765 = vst [vmem:[#allocation77_spill] sm:$0xff] %v4087_v32  ;;  %v395_v36 = vld [vmem:[#allocation4] sm:$0xff]  ;;  %v4094_v8 = vpack.c.bf16 %v587_v42, %v583_v17 }
 0x103   : > { %2406 = vmatprep.subr.bf16.mxu1 %v4076_v16  ;;  %4766 = vst [vmem:[#allocation78_spill] sm:$0xff] %v4090_v48  ;;  %831 = vmatprep.mubr.f32.mxu0 %v395_v36 }
 0x104   : > { %4767 = vst [vmem:[#allocation79_spill] sm:$0xff] %v4094_v8  ;;  %902 = vmatprep.mubr.f32.mxu1 %v395_v36 }
 0x105   : > { %2344 = vmatpush1.bf16.msra.mxu0 %v4078_v11 }
 0x106   : > { %2408 = vmatpush1.bf16.msra.mxu1 %v4082_v9  ;;  %2346 = vmatprep.subr.bf16.mxu0 %v4085_v61  ;;  %v596_v61 = vld [vmem:[%s3784_s16 + $0x18] sm:$0xff] }
 0x107   : > { %2410 = vmatprep.subr.bf16.mxu1 %v4087_v32 }
 0x109   : > { %2348 = vmatpush1.bf16.msra.mxu0 %v4090_v48 }
 0x10a   : > { %2412 = vmatpush1.bf16.msra.mxu1 %v4094_v8  ;;  %2414 = vmatprep.subr.bf16.mxu0 %v3809_v7  ;;  %v595_v8 = vld [vmem:[%s3784_s16 + $0x10] sm:$0xff] }
 0x10b   : > { %2446 = vmatprep.subr.bf16.mxu1 %v3824_v26 }
 0x19f   : > { %v663_v24 = vpop.f32.mrb[0].mxu0 }
 0x1a0   : > { %v739_v43 = vadd.f32 %v663_v24, %v593_v53  ;;  %v665_v58 = vpop.f32.mrb[1].mxu0  ;;  %v734_v36 = vpop.f32.mrb[0].mxu1  ;;  %v394_v24 = vld [vmem:[#allocation3] sm:$0xff] }
 0x1a1   : > { %v740_v44 = vadd.f32 %v665_v58, %v594_v0  ;;  %v736_v48 = vpop.f32.mrb[1].mxu1  ;;  %v741_v7 = vadd.f32 %v734_v36, %v595_v8  ;;  %v4773_v8 = vld [vmem:[#allocation35_spill] sm:$0xff]  ;;  %v4774_v36 = vld [vmem:[#allocation36_spill] sm:$0xff] }
 0x1a2   : > { %v2169_v42 = vmul.f32 -1.442695, %v739_v43  ;;  %v742_v32 = vadd.f32 %v736_v48, %v596_v61  ;;  %v4772_v48 = vld [vmem:[#allocation32_spill] sm:$0xff] }
 0x1a3   : > { %v2170_v17 = vmul.f32 -1.442695, %v740_v44 }
 0x1a4   : > { %3097 = vpow2.f32 %v2169_v42  ;;  %v2171_v9 = vmul.f32 -1.442695, %v742_v32 }
 0x1a5   : > { %3099 = vpow2.f32 %v2170_v17 }
 0x1a6   : > { %3101 = vpow2.f32 %v2171_v9 }
 0x1a7   : > { %3103 = vtanh.f32 %v741_v7  ;;  %v4768_v7 = vmov 0.0  }
 0x1ae   : > { %v3098_v11 = vpop.eup %3097 }
 0x1af   : > { %v3100_v26 = vpop.eup %3099  ;;  %v746_v16 = vadd.f32 1.0, %v3098_v11 }
 0x1b0   : > { %v752_v63 = vadd.f32 1.0, %v3100_v26  ;;  %v3102_v53 = vpop.eup %3101  ;;  %v4769_v26 = vld [vmem:[#allocation33_spill] sm:$0xff] }
 0x1b1   : > { %3105 = vrcp.f32 %v746_v16  ;;  %v3104_v0 = vpop.eup %3103  ;;  %v759_v58 = vadd.f32 1.0, %v3102_v53  ;;  %v4771_v16 = vld [vmem:[#allocation34_spill] sm:$0xff]  ;;  %v4775_v53 = vld [vmem:[#allocation37_spill] sm:$0xff] }
 0x1b2   : > { %3107 = vrcp.f32 %v752_v63  ;;  %v4770_v63 = vld [vmem:[#allocation30_spill] sm:$0xff] }
 0x1b3   : > { %3109 = vrcp.f32 %v759_v58  ;;  %v4779_v58 = vld [vmem:[#allocation41_spill] sm:$0xff] }
 0x1bb   : > { %v3106_v43 = vpop.eup %3105 }
 0x1bc   : > { %v3108_v44 = vpop.eup %3107  ;;  %v763_v42 = vmul.f32 %v3106_v43, %v3104_v0  ;;  %v4776_v0 = vld [vmem:[#allocation38_spill] sm:$0xff]  ;;  %v4778_v43 = vld [vmem:[#allocation40_spill] sm:$0xff] }
 0x1bd   : > { %v762_v17 = vmul.f32 %v3108_v44, %v394_v24  ;;  %v3110_v9 = vpop.eup %3109  ;;  %v4777_v24 = vld [vmem:[#allocation39_spill] sm:$0xff]  ;;  %v4780_v44 = vld [vmem:[#allocation42_spill] sm:$0xff] }
 0x1bf   : > { %v4105_v61 = vadd.f32 %v763_v42, %v762_v17  ;;  %v4781_v42 = vld [vmem:[#allocation43_spill] sm:$0xff]  ;;  %v4782_v17 = vld [vmem:[#allocation44_spill] sm:$0xff] }
 0x1c1   : > { %3111 = vtanh.f32 %v4105_v61 }
 0x1cb   : > { %v3112_v32 = vpop.eup %3111 }
 0x1cc   : > { %v766_v11 = vmul.f32 %v3112_v32, %v3110_v9  ;;  %v4783_v9 = vld [vmem:[#allocation45_spill] sm:$0xff]  ;;  %v4784_v32 = vld [vmem:[#allocation46_spill] sm:$0xff] }
 0x1ce   : > { %832 = vmatmul.mubr.f32.vlgmr.msra.gmra.mrb[2].mxu0 %v766_v11  ;;  %903 = vmatmul.mubr.f32.vlgmr.msra.gmra.mrb[2].mxu1 %v766_v11 }
 0x1cf   : > { %2416 = vmatpush1.bf16.msra.mxu0 %v3813_v12  ;;  %2448 = vmatpush1.bf16.msra.mxu1 %v3826_v29 }
 0x1d0   : > { %2418 = vmatprep.subr.bf16.mxu0 %v3815_v13  ;;  %2450 = vmatprep.subr.bf16.mxu1 %v3836_v37 }
 0x1d1   : > { %1003 = vmatprep.mubr.f32.mxu0 %v4768_v7  ;;  %1074 = vmatprep.mubr.f32.mxu1 %v4768_v7 }
 0x1d3   : > { %2420 = vmatpush1.bf16.msra.mxu0 %v3819_v18  ;;  %2452 = vmatpush1.bf16.msra.mxu1 %v3838_v41 }
 0x1d4   : > { %2422 = vmatprep.subr.bf16.mxu0 %v3822_v21  ;;  %2454 = vmatprep.subr.bf16.mxu1 %v3844_v49 }
 0x1d7   : > { %2424 = vmatpush1.bf16.msra.mxu0 %v3829_v30  ;;  %2456 = vmatpush1.bf16.msra.mxu1 %v3850_v52 }
 0x1d8   : > { %2426 = vmatprep.subr.bf16.mxu0 %v3833_v34  ;;  %2458 = vmatprep.subr.bf16.mxu1 %v3853_v56 }
 0x1db   : > { %2428 = vmatpush1.bf16.msra.mxu0 %v3842_v46  ;;  %2460 = vmatpush1.bf16.msra.mxu1 %v3862_v2 }
 0x1dc   : > { %2430 = vmatprep.subr.bf16.mxu0 %v3847_v50  ;;  %2462 = vmatprep.subr.bf16.mxu1 %v3865_v4 }
 0x1df   : > { %2432 = vmatpush1.bf16.msra.mxu0 %v3856_v59  ;;  %2464 = vmatpush1.bf16.msra.mxu1 %v3874_v19 }
 0x1e0   : > { %2434 = vmatprep.subr.bf16.mxu0 %v3859_v62  ;;  %2466 = vmatprep.subr.bf16.mxu1 %v3877_v22 }
 0x1e3   : > { %2436 = vmatpush1.bf16.msra.mxu0 %v3868_v10  ;;  %2468 = vmatpush1.bf16.msra.mxu1 %v3886_v35 }
 0x1e4   : > { %2438 = vmatprep.subr.bf16.mxu0 %v3871_v14  ;;  %2470 = vmatprep.subr.bf16.mxu1 %v3889_v38 }
 0x1e7   : > { %2440 = vmatpush1.bf16.msra.mxu0 %v3880_v28  ;;  %2472 = vmatpush1.bf16.msra.mxu1 %v3896_v47 }
 0x1e8   : > { %2442 = vmatprep.subr.bf16.mxu0 %v3883_v31  ;;  %2474 = vmatprep.subr.bf16.mxu1 %v3901_v55 }
 0x1eb   : > { %2444 = vmatpush1.bf16.msra.mxu0 %v3892_v45  ;;  %2476 = vmatpush1.bf16.msra.mxu1 %v3907_v3 }
 0x1ec   : > { %2478 = vmatprep.subr.bf16.mxu0 %v3898_v51  ;;  %2542 = vmatprep.subr.bf16.mxu1 %v3913_v15 }
 0x1ee   : > { %1004 = vmatmul.mubr.f32.vlgmr.msra.gmra.mrb[4].mxu0 %v766_v11  ;;  %1075 = vmatmul.mubr.f32.vlgmr.msra.gmra.mrb[4].mxu1 %v766_v11  ;;  %v4785_v11 = vld [vmem:[#allocation47_spill] sm:$0xff] }
 0x1ef   : > { %2480 = vmatpush1.bf16.msra.mxu0 %v3904_v1  ;;  %2544 = vmatpush1.bf16.msra.mxu1 %v3919_v27 }
 0x1f0   : > { %2482 = vmatprep.subr.bf16.mxu0 %v3910_v6  ;;  %2546 = vmatprep.subr.bf16.mxu1 %v3925_v40 }
 0x1f3   : > { %2484 = vmatpush1.bf16.msra.mxu0 %v3916_v25  ;;  %2548 = vmatpush1.bf16.msra.mxu1 %v3931_v57 }
 0x1f4   : > { %2486 = vmatprep.subr.bf16.mxu0 %v3922_v33  ;;  %2550 = vmatprep.subr.bf16.mxu1 %v3937_v5 }
 0x1f7   : > { %2488 = vmatpush1.bf16.msra.mxu0 %v3928_v54  ;;  %2552 = vmatpush1.bf16.msra.mxu1 %v3943_v23 }
 0x1f8   : > { %2490 = vmatprep.subr.bf16.mxu0 %v3934_v60  ;;  %2554 = vmatprep.subr.bf16.mxu1 %v3949_v39 }
 0x1fb   : > { %2492 = vmatpush1.bf16.msra.mxu0 %v3940_v20  ;;  %2556 = vmatpush1.bf16.msra.mxu1 %v4769_v26 }
 0x1fc   : > { %2494 = vmatprep.subr.bf16.mxu0 %v4770_v63  ;;  %2558 = vmatprep.subr.bf16.mxu1 %v4771_v16 }
 0x1ff   : > { %2496 = vmatpush1.bf16.msra.mxu0 %v4772_v48  ;;  %2560 = vmatpush1.bf16.msra.mxu1 %v4773_v8 }
 0x200   : > { %2498 = vmatprep.subr.bf16.mxu0 %v4774_v36  ;;  %2562 = vmatprep.subr.bf16.mxu1 %v4775_v53  ;;  %v4786_v53 = vld [vmem:[#allocation48_spill] sm:$0xff] }
 0x203   : > { %2500 = vmatpush1.bf16.msra.mxu0 %v4776_v0  ;;  %2564 = vmatpush1.bf16.msra.mxu1 %v4777_v24  ;;  %v4787_v0 = vld [vmem:[#allocation49_spill] sm:$0xff]  ;;  %v4788_v24 = vld [vmem:[#allocation50_spill] sm:$0xff] }
 0x204   : > { %2502 = vmatprep.subr.bf16.mxu0 %v4778_v43  ;;  %2566 = vmatprep.subr.bf16.mxu1 %v4779_v58  ;;  %v4789_v43 = vld [vmem:[#allocation51_spill] sm:$0xff]  ;;  %v4790_v58 = vld [vmem:[#allocation52_spill] sm:$0xff] }
 0x207   : > { %2504 = vmatpush1.bf16.msra.mxu0 %v4780_v44  ;;  %2568 = vmatpush1.bf16.msra.mxu1 %v4781_v42  ;;  %v4791_v44 = vld [vmem:[#allocation53_spill] sm:$0xff]  ;;  %v4792_v42 = vld [vmem:[#allocation54_spill] sm:$0xff] }
 0x208   : > { %2506 = vmatprep.subr.bf16.mxu0 %v4782_v17  ;;  %2570 = vmatprep.subr.bf16.mxu1 %v4783_v9  ;;  %v4793_v17 = vld [vmem:[#allocation55_spill] sm:$0xff]  ;;  %v4794_v9 = vld [vmem:[#allocation56_spill] sm:$0xff] }
 0x20b   : > { %2508 = vmatpush1.bf16.msra.mxu0 %v4784_v32  ;;  %2572 = vmatpush1.bf16.msra.mxu1 %v4785_v11  ;;  %v4795_v32 = vld [vmem:[#allocation57_spill] sm:$0xff]  ;;  %v4796_v11 = vld [vmem:[#allocation58_spill] sm:$0xff] }
 0x20c   : > { %2510 = vmatprep.subr.bf16.mxu0 %v4786_v53  ;;  %2574 = vmatprep.subr.bf16.mxu1 %v4787_v0  ;;  %v4797_v53 = vld [vmem:[#allocation59_spill] sm:$0xff]  ;;  %v4798_v0 = vld [vmem:[#allocation60_spill] sm:$0xff] }
 0x20f   : > { %2512 = vmatpush1.bf16.msra.mxu0 %v4788_v24  ;;  %2576 = vmatpush1.bf16.msra.mxu1 %v4789_v43  ;;  %v4799_v24 = vld [vmem:[#allocation61_spill] sm:$0xff]  ;;  %v4800_v43 = vld [vmem:[#allocation62_spill] sm:$0xff] }
 0x210   : > { %2514 = vmatprep.subr.bf16.mxu0 %v4790_v58  ;;  %2578 = vmatprep.subr.bf16.mxu1 %v4791_v44  ;;  %v4801_v58 = vld [vmem:[#allocation63_spill] sm:$0xff]  ;;  %v4802_v44 = vld [vmem:[#allocation64_spill] sm:$0xff] }
 0x213   : > { %2516 = vmatpush1.bf16.msra.mxu0 %v4792_v42  ;;  %2580 = vmatpush1.bf16.msra.mxu1 %v4793_v17  ;;  %v4803_v42 = vld [vmem:[#allocation65_spill] sm:$0xff]  ;;  %v4804_v17 = vld [vmem:[#allocation66_spill] sm:$0xff] }
 0x214   : > { %2518 = vmatprep.subr.bf16.mxu0 %v4794_v9  ;;  %2582 = vmatprep.subr.bf16.mxu1 %v4795_v32  ;;  %v4805_v9 = vld [vmem:[#allocation67_spill] sm:$0xff]  ;;  %v4806_v32 = vld [vmem:[#allocation68_spill] sm:$0xff] }
 0x217   : > { %2520 = vmatpush1.bf16.msra.mxu0 %v4796_v11  ;;  %2584 = vmatpush1.bf16.msra.mxu1 %v4797_v53  ;;  %v4807_v11 = vld [vmem:[#allocation69_spill] sm:$0xff]  ;;  %v4808_v53 = vld [vmem:[#allocation70_spill] sm:$0xff] }
 0x218   : > { %2522 = vmatprep.subr.bf16.mxu0 %v4798_v0  ;;  %2586 = vmatprep.subr.bf16.mxu1 %v4799_v24  ;;  %v4809_v0 = vld [vmem:[#allocation71_spill] sm:$0xff]  ;;  %v4810_v24 = vld [vmem:[#allocation72_spill] sm:$0xff] }
 0x21b   : > { %2524 = vmatpush1.bf16.msra.mxu0 %v4800_v43  ;;  %2588 = vmatpush1.bf16.msra.mxu1 %v4801_v58  ;;  %v4811_v43 = vld [vmem:[#allocation73_spill] sm:$0xff]  ;;  %v4812_v58 = vld [vmem:[#allocation74_spill] sm:$0xff] }
 0x21c   : > { %2526 = vmatprep.subr.bf16.mxu0 %v4802_v44  ;;  %2590 = vmatprep.subr.bf16.mxu1 %v4803_v42  ;;  %v4813_v44 = vld [vmem:[#allocation75_spill] sm:$0xff]  ;;  %v4814_v42 = vld [vmem:[#allocation76_spill] sm:$0xff] }
 0x21f   : > { %2528 = vmatpush1.bf16.msra.mxu0 %v4804_v17  ;;  %2592 = vmatpush1.bf16.msra.mxu1 %v4805_v9  ;;  %v4815_v17 = vld [vmem:[#allocation77_spill] sm:$0xff]  ;;  %v4816_v9 = vld [vmem:[#allocation78_spill] sm:$0xff] }
 0x220   : > { %2530 = vmatprep.subr.bf16.mxu0 %v4806_v32  ;;  %2594 = vmatprep.subr.bf16.mxu1 %v4807_v11  ;;  %v4817_v32 = vld [vmem:[#allocation79_spill] sm:$0xff]  ;;  %v4818_v11 = vld [vmem:[#allocation26_spill] sm:$0xff] }
 0x223   : > { %2532 = vmatpush1.bf16.msra.mxu0 %v4808_v53  ;;  %2596 = vmatpush1.bf16.msra.mxu1 %v4809_v0  ;;  %v4819_v53 = vld [vmem:[#allocation27_spill] sm:$0xff]  ;;  %v4206_v0 = vld [vmem:[#allocation12] sm:$0xff] }
 0x224   : > { %2534 = vmatprep.subr.bf16.mxu0 %v4810_v24  ;;  %2598 = vmatprep.subr.bf16.mxu1 %v4811_v43  ;;  %4820 = vst [vmem:[#allocation80_spill] sm:$0xff] %v4206_v0  ;;  %v4208_v24 = vld [vmem:[#allocation12 + $0x8] sm:$0xff] }
 0x225   : > { %4821 = vst [vmem:[#allocation81_spill] sm:$0xff] %v4208_v24 }
 0x227   : > { %2536 = vmatpush1.bf16.msra.mxu0 %v4812_v58  ;;  %2600 = vmatpush1.bf16.msra.mxu1 %v4813_v44 }
 0x228   : > { %2538 = vmatprep.subr.bf16.mxu0 %v4814_v42  ;;  %2602 = vmatprep.subr.bf16.mxu1 %v4815_v17 }
 0x22b   : > { %2540 = vmatpush1.bf16.msra.mxu0 %v4816_v9  ;;  %2604 = vmatpush1.bf16.msra.mxu1 %v4817_v32  ;;  %v4212_v32 = vld [vmem:[#allocation12 + $0x18] sm:$0xff] }
 0x22c   : > { %2606 = vmatprep.subr.bf16.mxu0 %v4818_v11  ;;  %2638 = vmatprep.subr.bf16.mxu1 %v4819_v53  ;;  %4822 = vst [vmem:[#allocation82_spill] sm:$0xff] %v4212_v32  ;;  %v4215_v11 = vld [vmem:[#allocation12 + $0x10] sm:$0xff] }
 0x22d   : > { %4823 = vst [vmem:[#allocation83_spill] sm:$0xff] %v4215_v11 }
 0x2a1   : > { %v833_v43 = vpop.f32.mrb[2].mxu0  ;;  %v904_v58 = vpop.f32.mrb[2].mxu1 }
 0x2a2   : > { %v834_v44 = vadd.f32 %v833_v43, %v4206_v0  ;;  %v835_v36 = vpop.f32.mrb[3].mxu0  ;;  %v906_v42 = vpop.f32.mrb[3].mxu1  ;;  %v905_v16 = vadd.f32 %v904_v58, %v4215_v11  ;;  %v2175_v58 = vld [vmem:[%s3784_s16 + $0x20] sm:$0xff]  ;;  %v2176_v11 = vld [vmem:[%s3784_s16 + $0x28] sm:$0xff] }
 0x2a3   : > { %v836_v17 = vadd.f32 %v835_v36, %v4208_v24  ;;  %v907_v53 = vadd.f32 %v906_v42, %v4212_v32 }
 0x2a4   : > { %v2172_v8 = vmul.f32 -1.442695, %v834_v44 }
 0x2a5   : > { %v2173_v9 = vmul.f32 -1.442695, %v836_v17  ;;  %v2174_v48 = vmul.f32 -1.442695, %v907_v53  ;;  %v396_v17 = vld [vmem:[#allocation5] sm:$0xff] }
 0x2a6   : > { %3113 = vpow2.f32 %v2172_v8 }
 0x2a7   : > { %3115 = vpow2.f32 %v2173_v9 }
 0x2a8   : > { %3117 = vpow2.f32 %v2174_v48 }
 0x2a9   : > { %3119 = vtanh.f32 %v905_v16 }
 0x2b0   : > { %v3114_v63 = vpop.eup %3113 }
 0x2b1   : > { %v3116_v43 = vpop.eup %3115  ;;  %v912_v0 = vadd.f32 1.0, %v3114_v63 }
 0x2b2   : > { %v918_v36 = vadd.f32 1.0, %v3116_v43  ;;  %v3118_v8 = vpop.eup %3117 }
 0x2b3   : > { %3121 = vrcp.f32 %v912_v0  ;;  %v3120_v44 = vpop.eup %3119  ;;  %v925_v24 = vadd.f32 1.0, %v3118_v8  ;;  %v2178_v8 = vld [vmem:[%s3784_s16 + $0x38] sm:$0xff] }
 0x2b4   : > { %3123 = vrcp.f32 %v918_v36 }
 0x2b5   : > { %3125 = vrcp.f32 %v925_v24 }
 0x2bd   : > { %v3122_v9 = vpop.eup %3121 }
 0x2be   : > { %v3124_v42 = vpop.eup %3123  ;;  %v929_v32 = vmul.f32 %v3122_v9, %v3120_v44  ;;  %v2177_v9 = vld [vmem:[%s3784_s16 + $0x30] sm:$0xff] }
 0x2bf   : > { %v928_v53 = vmul.f32 %v3124_v42, %v396_v17  ;;  %v3126_v42 = vpop.eup %3125 }
 0x2c1   : > { %v1005_v26 = vpop.f32.mrb[4].mxu0  ;;  %v1076_v20 = vpop.f32.mrb[4].mxu1  ;;  %v4220_v63 = vadd.f32 %v929_v32, %v928_v53 }
 0x2c2   : > { %v1081_v16 = vadd.f32 %v2175_v58, %v1005_v26  ;;  %v1007_v48 = vpop.f32.mrb[5].mxu0  ;;  %v1078_v0 = vpop.f32.mrb[5].mxu1  ;;  %v1083_v32 = vadd.f32 %v2177_v9, %v1076_v20  ;;  %v4825_v9 = vld [vmem:[#allocation31_spill] sm:$0xff] }
 0x2c3   : > { %v1082_v43 = vadd.f32 %v2176_v11, %v1007_v48  ;;  %3127 = vtanh.f32 %v4220_v63  ;;  %v1084_v17 = vadd.f32 %v2178_v8, %v1078_v0 }
 0x2c4   : > { %v2179_v36 = vmul.f32 -1.442695, %v1081_v16 }
 0x2c5   : > { %v2180_v44 = vmul.f32 -1.442695, %v1082_v43  ;;  %v2181_v60 = vmul.f32 -1.442695, %v1084_v17 }
 0x2c6   : > { %3129 = vpow2.f32 %v2179_v36 }
 0x2c7   : > { %3131 = vpow2.f32 %v2180_v44 }
 0x2c8   : > { %3133 = vpow2.f32 %v2181_v60 }
 0x2c9   : > { %3135 = vtanh.f32 %v1083_v32  ;;  %v4827_v32 = vld [vmem:[#allocation33_spill] sm:$0xff] }
 0x2cd   : > { %v3128_v39 = vpop.eup %3127 }
 0x2ce   : > { %v932_v53 = vmul.f32 %v3128_v39, %v3126_v42  ;;  %v4826_v42 = vld [vmem:[#allocation29_spill] sm:$0xff] }
 0x2d0   : > { %v3130_v24 = vpop.eup %3129  ;;  %933 = vst [vmem:[%s3799_s19] sm:$0xff] %v932_v53  ;;  %1173 = vmatprep.mubr.f32.mxu0 %v932_v53  ;;  %1244 = vmatprep.mubr.f32.mxu1 %v932_v53  ;;  %v4828_v53 = vld [vmem:[#allocation30_spill] sm:$0xff] }
 0x2d1   : > { %v3132_v26 = vpop.eup %3131  ;;  %v1088_v11 = vadd.f32 1.0, %v3130_v24  ;;  %v4829_v24 = vld [vmem:[#allocation34_spill] sm:$0xff] }
 0x2d2   : > { %v1094_v58 = vadd.f32 1.0, %v3132_v26  ;;  %v3134_v16 = vpop.eup %3133  ;;  %v4830_v26 = vld [vmem:[#allocation32_spill] sm:$0xff] }
 0x2d3   : > { %3137 = vrcp.f32 %v1088_v11  ;;  %v3136_v48 = vpop.eup %3135  ;;  %v1101_v44 = vadd.f32 1.0, %v3134_v16  ;;  %v4831_v11 = vld [vmem:[#allocation35_spill] sm:$0xff]  ;;  %v4833_v16 = vld [vmem:[#allocation37_spill] sm:$0xff] }
 0x2d4   : > { %3139 = vrcp.f32 %v1094_v58  ;;  %v4832_v58 = vld [vmem:[#allocation36_spill] sm:$0xff] }
 0x2d5   : > { %3141 = vrcp.f32 %v1101_v44  ;;  %v4838_v44 = vld [vmem:[#allocation42_spill] sm:$0xff] }
 0x2dd   : > { %v3138_v0 = vpop.eup %3137 }
 0x2de   : > { %v3140_v43 = vpop.eup %3139  ;;  %v1105_v36 = vmul.f32 %v3138_v0, %v3136_v48  ;;  %v4834_v48 = vld [vmem:[#allocation38_spill] sm:$0xff]  ;;  %v4835_v0 = vld [vmem:[#allocation39_spill] sm:$0xff] }
 0x2df   : > { %v1104_v20 = vmul.f32 %v3140_v43, %v4105_v61  ;;  %v3142_v8 = vpop.eup %3141  ;;  %v4824_v61 = vld [vmem:[#allocation28_spill] sm:$0xff] }
 0x2e0   : > { %v4836_v43 = vld [vmem:[#allocation40_spill] sm:$0xff] }
 0x2e1   : > { %v4227_v39 = vadd.f32 %v1105_v36, %v1104_v20  ;;  %v4837_v36 = vld [vmem:[#allocation41_spill] sm:$0xff]  ;;  %v4839_v20 = vld [vmem:[#allocation43_spill] sm:$0xff] }
 0x2e3   : > { %3143 = vtanh.f32 %v4227_v39 }
 0x2ed   : > { %v3144_v17 = vpop.eup %3143 }
 0x2ee   : > { %v1108_v60 = vmul.f32 %v3144_v17, %v3142_v8  ;;  %v4840_v8 = vld [vmem:[#allocation44_spill] sm:$0xff]  ;;  %v4841_v17 = vld [vmem:[#allocation45_spill] sm:$0xff] }
 0x2f0   : > { %1174 = vmatmul.mubr.f32.vlgmr.msra.gmra.mrb[6].mxu0 %v1108_v60  ;;  %1245 = vmatmul.mubr.f32.vlgmr.msra.gmra.mrb[6].mxu1 %v1108_v60 }
 0x2f1   : > { %2608 = vmatpush1.bf16.msra.mxu0 %v3813_v12  ;;  %2640 = vmatpush1.bf16.msra.mxu1 %v3826_v29 }
 0x2f2   : > { %2610 = vmatprep.subr.bf16.mxu0 %v3815_v13  ;;  %2642 = vmatprep.subr.bf16.mxu1 %v3836_v37 }
 0x2f3   : > { %1346 = vmatprep.mubr.f32.mxu0 %v4768_v7  ;;  %1417 = vmatprep.mubr.f32.mxu1 %v4768_v7 }
 0x2f5   : > { %2612 = vmatpush1.bf16.msra.mxu0 %v3819_v18  ;;  %2644 = vmatpush1.bf16.msra.mxu1 %v3838_v41 }
 0x2f6   : > { %2614 = vmatprep.subr.bf16.mxu0 %v3822_v21  ;;  %2646 = vmatprep.subr.bf16.mxu1 %v3844_v49 }
 0x2f9   : > { %2616 = vmatpush1.bf16.msra.mxu0 %v3829_v30  ;;  %2648 = vmatpush1.bf16.msra.mxu1 %v3850_v52 }
 0x2fa   : > { %2618 = vmatprep.subr.bf16.mxu0 %v3833_v34  ;;  %2650 = vmatprep.subr.bf16.mxu1 %v3853_v56 }
 0x2fd   : > { %2620 = vmatpush1.bf16.msra.mxu0 %v3842_v46  ;;  %2652 = vmatpush1.bf16.msra.mxu1 %v3862_v2 }
 0x2fe   : > { %2622 = vmatprep.subr.bf16.mxu0 %v3847_v50  ;;  %2654 = vmatprep.subr.bf16.mxu1 %v3865_v4 }
 0x301   : > { %2624 = vmatpush1.bf16.msra.mxu0 %v3856_v59  ;;  %2656 = vmatpush1.bf16.msra.mxu1 %v3874_v19 }
 0x302   : > { %2626 = vmatprep.subr.bf16.mxu0 %v3859_v62  ;;  %2658 = vmatprep.subr.bf16.mxu1 %v3877_v22 }
 0x305   : > { %2628 = vmatpush1.bf16.msra.mxu0 %v3868_v10  ;;  %2660 = vmatpush1.bf16.msra.mxu1 %v3886_v35 }
 0x306   : > { %2630 = vmatprep.subr.bf16.mxu0 %v3871_v14  ;;  %2662 = vmatprep.subr.bf16.mxu1 %v3889_v38 }
 0x309   : > { %2632 = vmatpush1.bf16.msra.mxu0 %v3880_v28  ;;  %2664 = vmatpush1.bf16.msra.mxu1 %v3896_v47 }
 0x30a   : > { %2634 = vmatprep.subr.bf16.mxu0 %v3883_v31  ;;  %2666 = vmatprep.subr.bf16.mxu1 %v3901_v55 }
 0x30d   : > { %2636 = vmatpush1.bf16.msra.mxu0 %v3892_v45  ;;  %2668 = vmatpush1.bf16.msra.mxu1 %v3907_v3 }
 0x30e   : > { %2670 = vmatprep.subr.bf16.mxu0 %v3898_v51  ;;  %2734 = vmatprep.subr.bf16.mxu1 %v3913_v15 }
 0x310   : > { %1347 = vmatmul.mubr.f32.vlgmr.msra.gmra.mrb[8].mxu0 %v1108_v60  ;;  %1418 = vmatmul.mubr.f32.vlgmr.msra.gmra.mrb[8].mxu1 %v1108_v60  ;;  %v4842_v60 = vld [vmem:[#allocation46_spill] sm:$0xff] }
 0x311   : > { %2672 = vmatpush1.bf16.msra.mxu0 %v3904_v1  ;;  %2736 = vmatpush1.bf16.msra.mxu1 %v3919_v27 }
 0x312   : > { %2674 = vmatprep.subr.bf16.mxu0 %v3910_v6  ;;  %2738 = vmatprep.subr.bf16.mxu1 %v3925_v40 }
 0x315   : > { %2676 = vmatpush1.bf16.msra.mxu0 %v3916_v25  ;;  %2740 = vmatpush1.bf16.msra.mxu1 %v3931_v57 }
 0x316   : > { %2678 = vmatprep.subr.bf16.mxu0 %v3922_v33  ;;  %2742 = vmatprep.subr.bf16.mxu1 %v3937_v5 }
 0x319   : > { %2680 = vmatpush1.bf16.msra.mxu0 %v3928_v54  ;;  %2744 = vmatpush1.bf16.msra.mxu1 %v3943_v23 }
 0x31a   : > { %2682 = vmatprep.subr.bf16.mxu0 %v4824_v61  ;;  %2746 = vmatprep.subr.bf16.mxu1 %v4825_v9 }
 0x31d   : > { %2684 = vmatpush1.bf16.msra.mxu0 %v4826_v42  ;;  %2748 = vmatpush1.bf16.msra.mxu1 %v4827_v32 }
 0x31e   : > { %2686 = vmatprep.subr.bf16.mxu0 %v4828_v53  ;;  %2750 = vmatprep.subr.bf16.mxu1 %v4829_v24  ;;  %v4879_v24 = vld [vmem:[#allocation81_spill] sm:$0xff] }
 0x321   : > { %2688 = vmatpush1.bf16.msra.mxu0 %v4830_v26  ;;  %2752 = vmatpush1.bf16.msra.mxu1 %v4831_v11  ;;  %v4878_v11 = vld [vmem:[#allocation80_spill] sm:$0xff] }
 0x322   : > { %2690 = vmatprep.subr.bf16.mxu0 %v4832_v58  ;;  %2754 = vmatprep.subr.bf16.mxu1 %v4833_v16  ;;  %v4843_v58 = vld [vmem:[#allocation47_spill] sm:$0xff]  ;;  %v4844_v16 = vld [vmem:[#allocation48_spill] sm:$0xff] }
 0x325   : > { %2692 = vmatpush1.bf16.msra.mxu0 %v4834_v48  ;;  %2756 = vmatpush1.bf16.msra.mxu1 %v4835_v0  ;;  %v4845_v48 = vld [vmem:[#allocation49_spill] sm:$0xff]  ;;  %v4846_v0 = vld [vmem:[#allocation50_spill] sm:$0xff] }
 0x326   : > { %2694 = vmatprep.subr.bf16.mxu0 %v4836_v43  ;;  %2758 = vmatprep.subr.bf16.mxu1 %v4837_v36  ;;  %v4847_v43 = vld [vmem:[#allocation51_spill] sm:$0xff]  ;;  %v4848_v36 = vld [vmem:[#allocation52_spill] sm:$0xff] }
 0x329   : > { %2696 = vmatpush1.bf16.msra.mxu0 %v4838_v44  ;;  %2760 = vmatpush1.bf16.msra.mxu1 %v4839_v20  ;;  %v4849_v44 = vld [vmem:[#allocation53_spill] sm:$0xff]  ;;  %v4850_v20 = vld [vmem:[#allocation54_spill] sm:$0xff] }
 0x32a   : > { %2698 = vmatprep.subr.bf16.mxu0 %v4840_v8  ;;  %2762 = vmatprep.subr.bf16.mxu1 %v4841_v17  ;;  %v4851_v8 = vld [vmem:[#allocation55_spill] sm:$0xff]  ;;  %v4852_v17 = vld [vmem:[#allocation56_spill] sm:$0xff] }
 0x32d   : > { %2700 = vmatpush1.bf16.msra.mxu0 %v4842_v60  ;;  %2764 = vmatpush1.bf16.msra.mxu1 %v4843_v58  ;;  %v4853_v60 = vld [vmem:[#allocation57_spill] sm:$0xff]  ;;  %v4854_v58 = vld [vmem:[#allocation58_spill] sm:$0xff] }
 0x32e   : > { %2702 = vmatprep.subr.bf16.mxu0 %v4844_v16  ;;  %2766 = vmatprep.subr.bf16.mxu1 %v4845_v48  ;;  %v4855_v16 = vld [vmem:[#allocation59_spill] sm:$0xff]  ;;  %v4856_v48 = vld [vmem:[#allocation60_spill] sm:$0xff] }
 0x331   : > { %2704 = vmatpush1.bf16.msra.mxu0 %v4846_v0  ;;  %2768 = vmatpush1.bf16.msra.mxu1 %v4847_v43  ;;  %v4857_v0 = vld [vmem:[#allocation61_spill] sm:$0xff]  ;;  %v4858_v43 = vld [vmem:[#allocation62_spill] sm:$0xff] }
 0x332   : > { %2706 = vmatprep.subr.bf16.mxu0 %v4848_v36  ;;  %2770 = vmatprep.subr.bf16.mxu1 %v4849_v44  ;;  %v4859_v36 = vld [vmem:[#allocation63_spill] sm:$0xff]  ;;  %v4860_v44 = vld [vmem:[#allocation64_spill] sm:$0xff] }
 0x335   : > { %2708 = vmatpush1.bf16.msra.mxu0 %v4850_v20  ;;  %2772 = vmatpush1.bf16.msra.mxu1 %v4851_v8  ;;  %v4861_v20 = vld [vmem:[#allocation65_spill] sm:$0xff]  ;;  %v4862_v8 = vld [vmem:[#allocation66_spill] sm:$0xff] }
 0x336   : > { %2710 = vmatprep.subr.bf16.mxu0 %v4852_v17  ;;  %2774 = vmatprep.subr.bf16.mxu1 %v4853_v60  ;;  %v4863_v17 = vld [vmem:[#allocation67_spill] sm:$0xff]  ;;  %v4864_v60 = vld [vmem:[#allocation68_spill] sm:$0xff] }
 0x339   : > { %2712 = vmatpush1.bf16.msra.mxu0 %v4854_v58  ;;  %2776 = vmatpush1.bf16.msra.mxu1 %v4855_v16  ;;  %v4865_v58 = vld [vmem:[#allocation69_spill] sm:$0xff]  ;;  %v4866_v16 = vld [vmem:[#allocation70_spill] sm:$0xff] }
 0x33a   : > { %2714 = vmatprep.subr.bf16.mxu0 %v4856_v48  ;;  %2778 = vmatprep.subr.bf16.mxu1 %v4857_v0  ;;  %v4867_v48 = vld [vmem:[#allocation71_spill] sm:$0xff]  ;;  %v4868_v0 = vld [vmem:[#allocation72_spill] sm:$0xff] }
 0x33d   : > { %2716 = vmatpush1.bf16.msra.mxu0 %v4858_v43  ;;  %2780 = vmatpush1.bf16.msra.mxu1 %v4859_v36  ;;  %v4869_v43 = vld [vmem:[#allocation73_spill] sm:$0xff]  ;;  %v4870_v36 = vld [vmem:[#allocation74_spill] sm:$0xff] }
 0x33e   : > { %2718 = vmatprep.subr.bf16.mxu0 %v4860_v44  ;;  %2782 = vmatprep.subr.bf16.mxu1 %v4861_v20  ;;  %v4871_v44 = vld [vmem:[#allocation75_spill] sm:$0xff]  ;;  %v4872_v20 = vld [vmem:[#allocation76_spill] sm:$0xff] }
 0x341   : > { %2720 = vmatpush1.bf16.msra.mxu0 %v4862_v8  ;;  %2784 = vmatpush1.bf16.msra.mxu1 %v4863_v17  ;;  %v4873_v8 = vld [vmem:[#allocation77_spill] sm:$0xff]  ;;  %v4874_v17 = vld [vmem:[#allocation78_spill] sm:$0xff] }
 0x342   : > { %2722 = vmatprep.subr.bf16.mxu0 %v4864_v60  ;;  %2786 = vmatprep.subr.bf16.mxu1 %v4865_v58  ;;  %v4875_v60 = vld [vmem:[#allocation79_spill] sm:$0xff]  ;;  %v4876_v58 = vld [vmem:[#allocation26_spill] sm:$0xff] }
 0x345   : > { %2724 = vmatpush1.bf16.msra.mxu0 %v4866_v16  ;;  %2788 = vmatpush1.bf16.msra.mxu1 %v4867_v48  ;;  %v4877_v16 = vld [vmem:[#allocation27_spill] sm:$0xff] }
 0x346   : > { %2726 = vmatprep.subr.bf16.mxu0 %v4868_v0  ;;  %2790 = vmatprep.subr.bf16.mxu1 %v4869_v43 }
 0x349   : > { %2728 = vmatpush1.bf16.msra.mxu0 %v4870_v36  ;;  %2792 = vmatpush1.bf16.msra.mxu1 %v4871_v44 }
 0x34a   : > { %2730 = vmatprep.subr.bf16.mxu0 %v4872_v20  ;;  %2794 = vmatprep.subr.bf16.mxu1 %v4873_v8  ;;  %v4880_v8 = vld [vmem:[#allocation82_spill] sm:$0xff] }
 0x34d   : > { %2732 = vmatpush1.bf16.msra.mxu0 %v4874_v17  ;;  %2796 = vmatpush1.bf16.msra.mxu1 %v4875_v60  ;;  %v4881_v60 = vld [vmem:[#allocation83_spill] sm:$0xff] }
 0x34e   : > { %2798 = vmatprep.subr.bf16.mxu0 %v4876_v58  ;;  %2830 = vmatprep.subr.bf16.mxu1 %v4877_v16 }
 0x3c3   : > { %v1175_v48 = vpop.f32.mrb[6].mxu0  ;;  %v1246_v0 = vpop.f32.mrb[6].mxu1 }
 0x3c4   : > { %v1176_v43 = vadd.f32 %v1175_v48, %v4878_v11  ;;  %v1177_v26 = vpop.f32.mrb[7].mxu0  ;;  %v1248_v36 = vpop.f32.mrb[7].mxu1  ;;  %v1247_v42 = vadd.f32 %v1246_v0, %v4881_v60  ;;  %v2186_v0 = vld [vmem:[%s3784_s16 + $0x40] sm:$0xff] }
 0x3c5   : > { %v1178_v44 = vadd.f32 %v1177_v26, %v4879_v24  ;;  %v1249_v17 = vadd.f32 %v1248_v36, %v4880_v8 }
 0x3c6   : > { %v2182_v53 = vmul.f32 -1.442695, %v1176_v43 }
 0x3c7   : > { %v2183_v20 = vmul.f32 -1.442695, %v1178_v44  ;;  %v2184_v32 = vmul.f32 -1.442695, %v1249_v17  ;;  %v2187_v17 = vld [vmem:[%s3784_s16 + $0x48] sm:$0xff] }
 0x3c8   : > { %3145 = vpow2.f32 %v2182_v53 }
 0x3c9   : > { %3147 = vpow2.f32 %v2183_v20 }
 0x3ca   : > { %3149 = vpow2.f32 %v2184_v32 }
 0x3cb   : > { %3151 = vtanh.f32 %v1247_v42 }
 0x3d2   : > { %v3146_v58 = vpop.eup %3145 }
 0x3d3   : > { %v3148_v16 = vpop.eup %3147  ;;  %v1254_v9 = vadd.f32 1.0, %v3146_v58 }
 0x3d4   : > { %v1260_v48 = vadd.f32 1.0, %v3148_v16  ;;  %v3150_v26 = vpop.eup %3149 }
 0x3d5   : > { %3153 = vrcp.f32 %v1254_v9  ;;  %v3152_v43 = vpop.eup %3151  ;;  %v1267_v24 = vadd.f32 1.0, %v3150_v26 }
 0x3d6   : > { %3155 = vrcp.f32 %v1260_v48 }
 0x3d7   : > { %3157 = vrcp.f32 %v1267_v24 }
 0x3df   : > { %v3154_v44 = vpop.eup %3153 }
 0x3e0   : > { %v3156_v53 = vpop.eup %3155  ;;  %v1271_v20 = vmul.f32 %v3154_v44, %v3152_v43  ;;  %v2189_v43 = vld [vmem:[%s3784_s16 + $0x58] sm:$0xff]  ;;  %v2188_v44 = vld [vmem:[%s3784_s16 + $0x50] sm:$0xff] }
 0x3e1   : > { %v1270_v36 = vmul.f32 %v3156_v53, %v4220_v63  ;;  %v3158_v53 = vpop.eup %3157 }
 0x3e3   : > { %v1348_v60 = vpop.f32.mrb[8].mxu0  ;;  %v1419_v8 = vpop.f32.mrb[8].mxu1  ;;  %v4335_v58 = vadd.f32 %v1271_v20, %v1270_v36 }
 0x3e4   : > { %v1424_v42 = vadd.f32 %v2186_v0, %v1348_v60  ;;  %v1350_v9 = vpop.f32.mrb[9].mxu0  ;;  %v1421_v32 = vpop.f32.mrb[9].mxu1  ;;  %v1426_v20 = vadd.f32 %v2188_v44, %v1419_v8  ;;  %v4926_v44 = vld [vmem:[#allocation72_spill] sm:$0xff] }
 0x3e5   : > { %v1425_v16 = vadd.f32 %v2187_v17, %v1350_v9  ;;  %3159 = vtanh.f32 %v4335_v58  ;;  %v1427_v63 = vadd.f32 %v2189_v43, %v1421_v32 }
 0x3e6   : > { %v2190_v48 = vmul.f32 -1.442695, %v1424_v42 }
 0x3e7   : > { %v2191_v26 = vmul.f32 -1.442695, %v1425_v16  ;;  %v2192_v61 = vmul.f32 -1.442695, %v1427_v63 }
 0x3e8   : > { %3161 = vpow2.f32 %v2190_v48 }
 0x3e9   : > { %3163 = vpow2.f32 %v2191_v26 }
 0x3ea   : > { %3165 = vpow2.f32 %v2192_v61 }
 0x3eb   : > { %3167 = vtanh.f32 %v1426_v20  ;;  %v4928_v20 = vld [vmem:[#allocation74_spill] sm:$0xff] }
 0x3ef   : > { %v3160_v11 = vpop.eup %3159 }
 0x3f0   : > { %v1274_v36 = vmul.f32 %v3160_v11, %v3158_v53  ;;  %v4927_v53 = vld [vmem:[#allocation73_spill] sm:$0xff] }
 0x3f2   : > { %v3162_v24 = vpop.eup %3161  ;;  %2185 = vst [vmem:[%s3799_s19 + $0x8] sm:$0xff] %v1274_v36  ;;  %1516 = vmatprep.mubr.f32.mxu0 %v1274_v36  ;;  %1587 = vmatprep.mubr.f32.mxu1 %v1274_v36  ;;  %v4929_v36 = vld [vmem:[#allocation75_spill] sm:$0xff] }
 0x3f3   : > { %v3164_v60 = vpop.eup %3163  ;;  %v1431_v0 = vadd.f32 1.0, %v3162_v24  ;;  %v4930_v24 = vld [vmem:[#allocation76_spill] sm:$0xff] }
 0x3f4   : > { %v1437_v17 = vadd.f32 1.0, %v3164_v60  ;;  %v3166_v42 = vpop.eup %3165  ;;  %v4931_v60 = vld [vmem:[#allocation77_spill] sm:$0xff] }
 0x3f5   : > { %3169 = vrcp.f32 %v1431_v0  ;;  %v3168_v9 = vpop.eup %3167  ;;  %v1444_v26 = vadd.f32 1.0, %v3166_v42  ;;  %v4932_v0 = vld [vmem:[#allocation78_spill] sm:$0xff] }
 0x3f6   : > { %3171 = vrcp.f32 %v1437_v17  ;;  %v4933_v17 = vld [vmem:[#allocation79_spill] sm:$0xff] }
 0x3f7   : > { %3173 = vrcp.f32 %v1444_v26 }
 0x3ff   : > { %v3170_v32 = vpop.eup %3169 }
 0x400   : > { %v3172_v16 = vpop.eup %3171  ;;  %v1448_v48 = vmul.f32 %v3170_v32, %v3168_v9  ;;  %v4934_v32 = vld [vmem:[#allocation80_spill] sm:$0xff] }
 0x401   : > { %v1447_v8 = vmul.f32 %v3172_v16, %v4227_v39  ;;  %v3174_v43 = vpop.eup %3173  ;;  %v4925_v39 = vld [vmem:[#allocation71_spill] sm:$0xff] }
 0x403   : > { %v4342_v11 = vadd.f32 %v1448_v48, %v1447_v8  ;;  %v4935_v8 = vld [vmem:[#allocation81_spill] sm:$0xff] }
 0x405   : > { %3175 = vtanh.f32 %v4342_v11 }
 0x40f   : > { %v3176_v63 = vpop.eup %3175 }
 0x410   : > { %v1451_v61 = vmul.f32 %v3176_v63, %v3174_v43 }
 0x412   : > { %1517 = vmatmul.mubr.f32.vlgmr.msra.gmra.mrb[10].mxu0 %v1451_v61  ;;  %1588 = vmatmul.mubr.f32.vlgmr.msra.gmra.mrb[10].mxu1 %v1451_v61 }
 0x413   : > { %2800 = vmatpush1.bf16.msra.mxu0 %v3813_v12  ;;  %2832 = vmatpush1.bf16.msra.mxu1 %v3826_v29  ;;  %v4882_v12 = vld [vmem:[#allocation28_spill] sm:$0xff]  ;;  %v4886_v29 = vld [vmem:[#allocation30_spill] sm:$0xff] }
 0x414   : > { %2802 = vmatprep.subr.bf16.mxu0 %v3815_v13  ;;  %2834 = vmatprep.subr.bf16.mxu1 %v3836_v37  ;;  %v4883_v13 = vld [vmem:[#allocation31_spill] sm:$0xff] }
 0x415   : > { %1689 = vmatprep.mubr.f32.mxu0 %v4768_v7  ;;  %1760 = vmatprep.mubr.f32.mxu1 %v4768_v7  ;;  %v4889_v37 = vld [vmem:[#allocation35_spill] sm:$0xff]  ;;  %v4924_v7 = vld [vmem:[#allocation70_spill] sm:$0xff] }
 0x417   : > { %2804 = vmatpush1.bf16.msra.mxu0 %v3819_v18  ;;  %2836 = vmatpush1.bf16.msra.mxu1 %v3838_v41  ;;  %v4884_v18 = vld [vmem:[#allocation29_spill] sm:$0xff]  ;;  %v4890_v41 = vld [vmem:[#allocation36_spill] sm:$0xff] }
 0x418   : > { %2806 = vmatprep.subr.bf16.mxu0 %v3822_v21  ;;  %2838 = vmatprep.subr.bf16.mxu1 %v3844_v49  ;;  %v4885_v21 = vld [vmem:[#allocation33_spill] sm:$0xff]  ;;  %v4892_v49 = vld [vmem:[#allocation38_spill] sm:$0xff] }
 0x41b   : > { %2808 = vmatpush1.bf16.msra.mxu0 %v3829_v30  ;;  %2840 = vmatpush1.bf16.msra.mxu1 %v3850_v52  ;;  %v4887_v30 = vld [vmem:[#allocation34_spill] sm:$0xff]  ;;  %v4894_v52 = vld [vmem:[#allocation40_spill] sm:$0xff] }
 0x41c   : > { %2810 = vmatprep.subr.bf16.mxu0 %v3833_v34  ;;  %2842 = vmatprep.subr.bf16.mxu1 %v3853_v56  ;;  %v4888_v34 = vld [vmem:[#allocation32_spill] sm:$0xff]  ;;  %v4895_v56 = vld [vmem:[#allocation41_spill] sm:$0xff] }
 0x41f   : > { %2812 = vmatpush1.bf16.msra.mxu0 %v3842_v46  ;;  %2844 = vmatpush1.bf16.msra.mxu1 %v3862_v2  ;;  %v4891_v46 = vld [vmem:[#allocation37_spill] sm:$0xff]  ;;  %v4898_v2 = vld [vmem:[#allocation44_spill] sm:$0xff] }
 0x420   : > { %2814 = vmatprep.subr.bf16.mxu0 %v3847_v50  ;;  %2846 = vmatprep.subr.bf16.mxu1 %v3865_v4  ;;  %v4893_v50 = vld [vmem:[#allocation39_spill] sm:$0xff]  ;;  %v4899_v4 = vld [vmem:[#allocation45_spill] sm:$0xff] }
 0x423   : > { %2816 = vmatpush1.bf16.msra.mxu0 %v3856_v59  ;;  %2848 = vmatpush1.bf16.msra.mxu1 %v3874_v19  ;;  %v4896_v59 = vld [vmem:[#allocation42_spill] sm:$0xff]  ;;  %v4902_v19 = vld [vmem:[#allocation48_spill] sm:$0xff] }
 0x424   : > { %2818 = vmatprep.subr.bf16.mxu0 %v3859_v62  ;;  %2850 = vmatprep.subr.bf16.mxu1 %v3877_v22  ;;  %v4897_v62 = vld [vmem:[#allocation43_spill] sm:$0xff]  ;;  %v4903_v22 = vld [vmem:[#allocation49_spill] sm:$0xff] }
 0x427   : > { %2820 = vmatpush1.bf16.msra.mxu0 %v3868_v10  ;;  %2852 = vmatpush1.bf16.msra.mxu1 %v3886_v35  ;;  %v4900_v10 = vld [vmem:[#allocation46_spill] sm:$0xff]  ;;  %v4906_v35 = vld [vmem:[#allocation52_spill] sm:$0xff] }
 0x428   : > { %2822 = vmatprep.subr.bf16.mxu0 %v3871_v14  ;;  %2854 = vmatprep.subr.bf16.mxu1 %v3889_v38  ;;  %v4901_v14 = vld [vmem:[#allocation47_spill] sm:$0xff]  ;;  %v4907_v38 = vld [vmem:[#allocation53_spill] sm:$0xff] }
 0x42b   : > { %2824 = vmatpush1.bf16.msra.mxu0 %v3880_v28  ;;  %2856 = vmatpush1.bf16.msra.mxu1 %v3896_v47  ;;  %v4904_v28 = vld [vmem:[#allocation50_spill] sm:$0xff]  ;;  %v4909_v47 = vld [vmem:[#allocation55_spill] sm:$0xff] }
 0x42c   : > { %2826 = vmatprep.subr.bf16.mxu0 %v3883_v31  ;;  %2858 = vmatprep.subr.bf16.mxu1 %v3901_v55  ;;  %v4905_v31 = vld [vmem:[#allocation51_spill] sm:$0xff]  ;;  %v4911_v55 = vld [vmem:[#allocation57_spill] sm:$0xff] }
 0x42f   : > { %2828 = vmatpush1.bf16.msra.mxu0 %v3892_v45  ;;  %2860 = vmatpush1.bf16.msra.mxu1 %v3907_v3  ;;  %v4908_v45 = vld [vmem:[#allocation54_spill] sm:$0xff]  ;;  %v4913_v3 = vld [vmem:[#allocation59_spill] sm:$0xff] }
 0x430   : > { %2862 = vmatprep.subr.bf16.mxu0 %v3898_v51  ;;  %2926 = vmatprep.subr.bf16.mxu1 %v3913_v15  ;;  %v4910_v51 = vld [vmem:[#allocation56_spill] sm:$0xff]  ;;  %v4915_v15 = vld [vmem:[#allocation61_spill] sm:$0xff] }
 0x432   : > { %1690 = vmatmul.mubr.f32.vlgmr.msra.gmra.mrb[12].mxu0 %v1451_v61  ;;  %1761 = vmatmul.mubr.f32.vlgmr.msra.gmra.mrb[12].mxu1 %v1451_v61 }
 0x433   : > { %2864 = vmatpush1.bf16.msra.mxu0 %v3904_v1  ;;  %2928 = vmatpush1.bf16.msra.mxu1 %v3919_v27  ;;  %v4912_v1 = vld [vmem:[#allocation58_spill] sm:$0xff]  ;;  %v4917_v27 = vld [vmem:[#allocation63_spill] sm:$0xff] }
 0x434   : > { %2866 = vmatprep.subr.bf16.mxu0 %v3910_v6  ;;  %2930 = vmatprep.subr.bf16.mxu1 %v3925_v40  ;;  %v4914_v6 = vld [vmem:[#allocation60_spill] sm:$0xff]  ;;  %v4919_v40 = vld [vmem:[#allocation65_spill] sm:$0xff] }
 0x437   : > { %2868 = vmatpush1.bf16.msra.mxu0 %v3916_v25  ;;  %2932 = vmatpush1.bf16.msra.mxu1 %v3931_v57  ;;  %v4916_v25 = vld [vmem:[#allocation62_spill] sm:$0xff]  ;;  %v4921_v57 = vld [vmem:[#allocation67_spill] sm:$0xff] }
 0x438   : > { %2870 = vmatprep.subr.bf16.mxu0 %v3922_v33  ;;  %2934 = vmatprep.subr.bf16.mxu1 %v3937_v5  ;;  %v4918_v33 = vld [vmem:[#allocation64_spill] sm:$0xff] }
 0x439   : > { %v4922_v5 = vld [vmem:[#allocation68_spill] sm:$0xff] }
 0x43b   : > { %2872 = vmatpush1.bf16.msra.mxu0 %v3928_v54  ;;  %2936 = vmatpush1.bf16.msra.mxu1 %v3943_v23  ;;  %v4920_v54 = vld [vmem:[#allocation66_spill] sm:$0xff]  ;;  %v4923_v23 = vld [vmem:[#allocation69_spill] sm:$0xff] }
 0x43c   : > { %2874 = vmatprep.subr.bf16.mxu0 %v4882_v12  ;;  %2938 = vmatprep.subr.bf16.mxu1 %v4883_v13  ;;  %v4936_v12 = vld [vmem:[#allocation82_spill] sm:$0xff] }
 0x43f   : > { %2876 = vmatpush1.bf16.msra.mxu0 %v4884_v18  ;;  %2940 = vmatpush1.bf16.msra.mxu1 %v4885_v21  ;;  %v4937_v21 = vld [vmem:[#allocation83_spill] sm:$0xff] }
 0x440   : > { %2878 = vmatprep.subr.bf16.mxu0 %v4886_v29  ;;  %2942 = vmatprep.subr.bf16.mxu1 %v4887_v30 }
 0x443   : > { %2880 = vmatpush1.bf16.msra.mxu0 %v4888_v34  ;;  %2944 = vmatpush1.bf16.msra.mxu1 %v4889_v37 }
 0x444   : > { %2882 = vmatprep.subr.bf16.mxu0 %v4890_v41  ;;  %2946 = vmatprep.subr.bf16.mxu1 %v4891_v46 }
 0x447   : > { %2884 = vmatpush1.bf16.msra.mxu0 %v4892_v49  ;;  %2948 = vmatpush1.bf16.msra.mxu1 %v4893_v50 }
 0x448   : > { %2886 = vmatprep.subr.bf16.mxu0 %v4894_v52  ;;  %2950 = vmatprep.subr.bf16.mxu1 %v4895_v56 }
 0x44b   : > { %2888 = vmatpush1.bf16.msra.mxu0 %v4896_v59  ;;  %2952 = vmatpush1.bf16.msra.mxu1 %v4897_v62 }
 0x44c   : > { %2890 = vmatprep.subr.bf16.mxu0 %v4898_v2  ;;  %2954 = vmatprep.subr.bf16.mxu1 %v4899_v4  ;;  %v2197_v2 = vld [vmem:[%s3784_s16 + $0x60] sm:$0xff]  ;;  %v2198_v4 = vld [vmem:[%s3784_s16 + $0x68] sm:$0xff] }
 0x44f   : > { %2892 = vmatpush1.bf16.msra.mxu0 %v4900_v10  ;;  %2956 = vmatpush1.bf16.msra.mxu1 %v4901_v14 }
 0x450   : > { %2894 = vmatprep.subr.bf16.mxu0 %v4902_v19  ;;  %2958 = vmatprep.subr.bf16.mxu1 %v4903_v22 }
 0x453   : > { %2896 = vmatpush1.bf16.msra.mxu0 %v4904_v28  ;;  %2960 = vmatpush1.bf16.msra.mxu1 %v4905_v31 }
 0x454   : > { %2898 = vmatprep.subr.bf16.mxu0 %v4906_v35  ;;  %2962 = vmatprep.subr.bf16.mxu1 %v4907_v38 }
 0x457   : > { %2900 = vmatpush1.bf16.msra.mxu0 %v4908_v45  ;;  %2964 = vmatpush1.bf16.msra.mxu1 %v4909_v47  ;;  %v2200_v47 = vld [vmem:[%s3784_s16 + $0x78] sm:$0xff] }
 0x458   : > { %2902 = vmatprep.subr.bf16.mxu0 %v4910_v51  ;;  %2966 = vmatprep.subr.bf16.mxu1 %v4911_v55  ;;  %v2199_v51 = vld [vmem:[%s3784_s16 + $0x70] sm:$0xff] }
 0x45b   : > { %2904 = vmatpush1.bf16.msra.mxu0 %v4912_v1  ;;  %2968 = vmatpush1.bf16.msra.mxu1 %v4913_v3 }
 0x45c   : > { %2906 = vmatprep.subr.bf16.mxu0 %v4914_v6  ;;  %2970 = vmatprep.subr.bf16.mxu1 %v4915_v15 }
 0x45f   : > { %2908 = vmatpush1.bf16.msra.mxu0 %v4916_v25  ;;  %2972 = vmatpush1.bf16.msra.mxu1 %v4917_v27 }
 0x460   : > { %2910 = vmatprep.subr.bf16.mxu0 %v4918_v33  ;;  %2974 = vmatprep.subr.bf16.mxu1 %v4919_v40 }
 0x463   : > { %2912 = vmatpush1.bf16.msra.mxu0 %v4920_v54  ;;  %2976 = vmatpush1.bf16.msra.mxu1 %v4921_v57 }
 0x464   : > { %2914 = vmatprep.subr.bf16.mxu0 %v4922_v5  ;;  %2978 = vmatprep.subr.bf16.mxu1 %v4923_v23 }
 0x467   : > { %2916 = vmatpush1.bf16.msra.mxu0 %v4924_v7  ;;  %2980 = vmatpush1.bf16.msra.mxu1 %v4925_v39 }
 0x468   : > { %2918 = vmatprep.subr.bf16.mxu0 %v4926_v44  ;;  %2982 = vmatprep.subr.bf16.mxu1 %v4927_v53 }
 0x46b   : > { %2920 = vmatpush1.bf16.msra.mxu0 %v4928_v20  ;;  %2984 = vmatpush1.bf16.msra.mxu1 %v4929_v36 }
 0x46c   : > { %2922 = vmatprep.subr.bf16.mxu0 %v4930_v24  ;;  %2986 = vmatprep.subr.bf16.mxu1 %v4931_v60 }
 0x46f   : > { %2924 = vmatpush1.bf16.msra.mxu0 %v4932_v0  ;;  %2988 = vmatpush1.bf16.msra.mxu1 %v4933_v17 }
 0x4e5   : > { %v1518_v42 = vpop.f32.mrb[10].mxu0  ;;  %v1589_v9 = vpop.f32.mrb[10].mxu1 }
 0x4e6   : > { %v1519_v16 = vadd.f32 %v1518_v42, %v4934_v32  ;;  %v1520_v48 = vpop.f32.mrb[11].mxu0  ;;  %v1591_v26 = vpop.f32.mrb[11].mxu1  ;;  %v1590_v29 = vadd.f32 %v1589_v9, %v4937_v21 }
 0x4e7   : > { %v1521_v43 = vadd.f32 %v1520_v48, %v4935_v8  ;;  %v1592_v13 = vadd.f32 %v1591_v26, %v4936_v12 }
 0x4e8   : > { %v2193_v63 = vmul.f32 -1.442695, %v1519_v16 }
 0x4e9   : > { %v2194_v61 = vmul.f32 -1.442695, %v1521_v43  ;;  %v2195_v18 = vmul.f32 -1.442695, %v1592_v13 }
 0x4ea   : > { %3177 = vpow2.f32 %v2193_v63 }
 0x4eb   : > { %3179 = vpow2.f32 %v2194_v61 }
 0x4ec   : > { %3181 = vpow2.f32 %v2195_v18 }
 0x4ed   : > { %3183 = vtanh.f32 %v1590_v29 }
 0x4f4   : > { %v3178_v30 = vpop.eup %3177 }
 0x4f5   : > { %v3180_v34 = vpop.eup %3179  ;;  %v1597_v37 = vadd.f32 1.0, %v3178_v30 }
 0x4f6   : > { %v1603_v41 = vadd.f32 1.0, %v3180_v34  ;;  %v3182_v46 = vpop.eup %3181 }
 0x4f7   : > { %3185 = vrcp.f32 %v1597_v37  ;;  %v3184_v49 = vpop.eup %3183  ;;  %v1610_v59 = vadd.f32 1.0, %v3182_v46 }
 0x4f8   : > { %3187 = vrcp.f32 %v1603_v41 }
 0x4f9   : > { %3189 = vrcp.f32 %v1610_v59 }
 0x501   : > { %v3186_v50 = vpop.eup %3185 }
 0x502   : > { %v3188_v52 = vpop.eup %3187  ;;  %v1614_v56 = vmul.f32 %v3186_v50, %v3184_v49 }
 0x503   : > { %v1613_v62 = vmul.f32 %v3188_v52, %v4335_v58  ;;  %v3190_v55 = vpop.eup %3189 }
 0x505   : > { %v1691_v10 = vpop.f32.mrb[12].mxu0  ;;  %v1762_v14 = vpop.f32.mrb[12].mxu1  ;;  %v4448_v19 = vadd.f32 %v1614_v56, %v1613_v62 }
 0x506   : > { %v1767_v22 = vadd.f32 %v2197_v2, %v1691_v10  ;;  %v1693_v28 = vpop.f32.mrb[13].mxu0  ;;  %v1764_v31 = vpop.f32.mrb[13].mxu1  ;;  %v1769_v6 = vadd.f32 %v2199_v51, %v1762_v14 }
 0x507   : > { %v1768_v35 = vadd.f32 %v2198_v4, %v1693_v28  ;;  %3191 = vtanh.f32 %v4448_v19  ;;  %v1770_v58 = vadd.f32 %v2200_v47, %v1764_v31 }
 0x508   : > { %v2201_v38 = vmul.f32 -1.442695, %v1767_v22 }
 0x509   : > { %v2202_v45 = vmul.f32 -1.442695, %v1768_v35  ;;  %v2203_v3 = vmul.f32 -1.442695, %v1770_v58 }
 0x50a   : > { %3193 = vpow2.f32 %v2201_v38 }
 0x50b   : > { %3195 = vpow2.f32 %v2202_v45 }
 0x50c   : > { %3197 = vpow2.f32 %v2203_v3 }
 0x50d   : > { %3199 = vtanh.f32 %v1769_v6 }
 0x511   : > { %v3192_v1 = vpop.eup %3191 }
 0x512   : > { %v1617_v15 = vmul.f32 %v3192_v1, %v3190_v55 }
 0x514   : > { %v3194_v25 = vpop.eup %3193  ;;  %2196 = vst [vmem:[%s3799_s19 + $0x10] sm:$0xff] %v1617_v15  ;;  %1859 = vmatprep.mubr.f32.mxu0 %v1617_v15  ;;  %1930 = vmatprep.mubr.f32.mxu1 %v1617_v15 }
 0x515   : > { %v3196_v27 = vpop.eup %3195  ;;  %v1774_v33 = vadd.f32 1.0, %v3194_v25 }
 0x516   : > { %v1780_v40 = vadd.f32 1.0, %v3196_v27  ;;  %v3198_v54 = vpop.eup %3197 }
 0x517   : > { %3201 = vrcp.f32 %v1774_v33  ;;  %v3200_v57 = vpop.eup %3199  ;;  %v1787_v39 = vadd.f32 1.0, %v3198_v54 }
 0x518   : > { %3203 = vrcp.f32 %v1780_v40 }
 0x519   : > { %3205 = vrcp.f32 %v1787_v39 }
 0x521   : > { %v3202_v5 = vpop.eup %3201 }
 0x522   : > { %v3204_v23 = vpop.eup %3203  ;;  %v1791_v7 = vmul.f32 %v3202_v5, %v3200_v57 }
 0x523   : > { %v1790_v44 = vmul.f32 %v3204_v23, %v4342_v11  ;;  %v3206_v20 = vpop.eup %3205 }
 0x525   : > { %v1792_v53 = vadd.f32 %v1791_v7, %v1790_v44 }
 0x527   : > { %1964 = vst [vmem:[#allocation3] sm:$0xff] %v1792_v53  ;;  %3207 = vtanh.f32 %v1792_v53  ;;  %1974 = vst [vmem:[#allocation18] sm:$0xff] (!%p2208_p5), %v1792_v53 }
 0x531   : > { %v3208_v36 = vpop.eup %3207 }
 0x532   : > { %v1794_v24 = vmul.f32 %v3208_v36, %v3206_v20 }
 0x534   : > { %1860 = vmatmul.mubr.f32.vlgmr.msra.gmra.mrb[14].mxu0 %v1794_v24  ;;  %1963 = vst [vmem:[#allocation2] sm:$0xff] %v1794_v24  ;;  %1931 = vmatmul.mubr.f32.vlgmr.msra.gmra.mrb[14].mxu1 %v1794_v24  ;;  %1971 = vst [vmem:[#allocation16] sm:$0xff] (!%p2208_p5), %v1794_v24 }
 0x607   : > { %v1861_v60 = vpop.f32.mrb[14].mxu0  ;;  %v1932_v0 = vpop.f32.mrb[14].mxu1 }
 0x608   : > { %v1862_v17 = vadd.f32 %v1861_v60, %v4934_v32  ;;  %v1863_v42 = vpop.f32.mrb[15].mxu0  ;;  %v1934_v9 = vpop.f32.mrb[15].mxu1  ;;  %v1933_v63 = vadd.f32 %v1932_v0, %v4937_v21 }
 0x609   : > { %v1864_v16 = vadd.f32 %v1863_v42, %v4935_v8  ;;  %v1935_v26 = vadd.f32 %v1934_v9, %v4936_v12 }
 0x60a   : > { %v2204_v48 = vmul.f32 -1.442695, %v1862_v17 }
 0x60b   : > { %v2205_v11 = vmul.f32 -1.442695, %v1864_v16  ;;  %v2206_v43 = vmul.f32 -1.442695, %v1935_v26 }
 0x60c   : > { %3209 = vpow2.f32 %v2204_v48 }
 0x60d   : > { %3211 = vpow2.f32 %v2205_v11 }
 0x60e   : > { %3213 = vpow2.f32 %v2206_v43 }
 0x60f   : > { %3215 = vtanh.f32 %v1933_v63 }
 0x616   : > { %v3210_v61 = vpop.eup %3209 }
 0x617   : > { %v3212_v13 = vpop.eup %3211  ;;  %v1940_v18 = vadd.f32 1.0, %v3210_v61 }
 0x618   : > { %v1946_v29 = vadd.f32 1.0, %v3212_v13  ;;  %v3214_v32 = vpop.eup %3213 }
 0x619   : > { %3217 = vrcp.f32 %v1940_v18  ;;  %v3216_v8 = vpop.eup %3215  ;;  %v1953_v41 = vadd.f32 1.0, %v3214_v32 }
 0x61a   : > { %3219 = vrcp.f32 %v1946_v29 }
 0x61b   : > { %3221 = vrcp.f32 %v1953_v41 }
 0x623   : > { %v3218_v30 = vpop.eup %3217 }
 0x624   : > { %v3220_v34 = vpop.eup %3219  ;;  %v1957_v37 = vmul.f32 %v3218_v30, %v3216_v8 }
 0x625   : > { %v1956_v12 = vmul.f32 %v3220_v34, %v4448_v19  ;;  %v3222_v21 = vpop.eup %3221 }
 0x627   : > { %v1958_v46 = vadd.f32 %v1957_v37, %v1956_v12 }
 0x629   : > { %3223 = vtanh.f32 %v1958_v46  ;;  %1966 = vst [vmem:[#allocation5] sm:$0xff] %v1958_v46  ;;  %1976 = vst [vmem:[#allocation18 + $0x8] sm:$0xff] (!%p2208_p5), %v1958_v46 }
 0x630   : > { %1970 = sbr.rel (%p2208_p5) target bundleno = 1592 (0x638), region = 72 }
 0x633   : > { %v3224_v49 = vpop.eup %3223 }
 0x634   : > { %v1960_v50 = vmul.f32 %v3224_v49, %v3222_v21 }
 0x636   : > { %2207 = vst [vmem:[%s3799_s19 + $0x18] sm:$0xff] %v1960_v50  ;;  %1965 = vst [vmem:[#allocation4] sm:$0xff] %v1960_v50 }
 0x637   : > { %1973 = vst [vmem:[#allocation16 + $0x8] sm:$0xff] %v1960_v50 }
 0x638 PF: > { %s3509_s12 = smov [#allocation16]   ;;  %s2220_s17 = sshll.u32 %s3580_s9, 9 }
 0x639   : > { %s2004_s24 = sshll.u32 %s3509_s12, 4  ;;  %s4466_s15 = scalar_lea.hbm %s4571_s6, %s2220_s17  ;;  %s2005_s24 = int_to_ptr.vmem [resolvable:$true] %s2004_s24 }
 0x63a   : > { %s3367_s26 = scalar_lea.vmem %s2005_s24, 256  ;;  %p4938_p13 = scmp.eq.s32.totalorder %s3580_s9, 1 }
 0x63b   : > { %p3368_p7 = scmp.ne.s32.totalorder %s2005_s24, %s3367_s26  ;;  %p3374_p0 = scmp.lt.s32.totalorder %s2005_s24, %s2005_s24 }
 0x63c   : > { %p3375_p10 = scmp.lt.s32.totalorder %s3367_s26, %s3367_s26 }
 0x63d   : > { %p3369_p1 = pnand %p3368_p7, %p4938_p13 }
 0x63e   : > { %p3376_p3 = por %p3375_p10, %p3374_p0 }
 0x63f   : > { %p3370_p2 = pneg %p3369_p1 }
 0x641   : > { %p3377_p12 = pnand %p3376_p3, %p3370_p2 }
 0x643   : > { %3380 = shalt.err (!%p3377_p12)
}
 0x644   : > { %s3381_s11 = scalar_lea.hbm %s4572_s7, 256  ;;  %p4939_p9 = pmov %p4938_p13 }
 0x645   : > { %p3382_p4 = scmp.ne.s32.totalorder %s4572_s7, %s3381_s11  ;;  %p3387_p5 = scmp.lt.u32.totalorder %s3381_s11, %s4572_s7 }
 0x647   : > { %p3383_p6 = pnand %p3382_p4, %p4939_p9 }
 0x649   : > { %p3384_p8 = pneg %p3383_p6 }
 0x64b   : > { %p3389_p7 = pnand %p3387_p5, %p3384_p8 }
 0x64d   : > { %3392 = shalt.err (!%p3389_p7)
}
 0x64e   : > { %s3510_s17 = smov 128   ;;  %s3511_s22 = smov 8  }
 0x64f   : > { %p4940_p13 = pmov %p4939_p9  ;;  %s1991_s16 = sshll.u32 %s3799_s19, 4  ;;  %s4490_s16 = int_to_ptr.vmem [resolvable:$true] %s1991_s16 }
 0x650   : > { %s3512_s13 = smov [#allocation18]   ;;  %s1978_s21 = scalar_lea.sflag [#allocation8], %s3780_s25 }
 0x651   : > { %3009 = dma.vmem_to_hbm [thread:$0]  (%p4940_p13), %s2005_s24, 256, %s4572_s7, [#allocation17], %s3510_s17, %s3510_s17, %s3511_s22  }
 0x652   : > { %s4492_s11 = sshll.u32 %s3512_s13, 4  ;;  %s3393_s18 = scalar_lea.vmem %s4490_s16, 512  ;;  %s2018_s11 = int_to_ptr.vmem [resolvable:$true] %s4492_s11 }
 0x653   : > { %p3394_p1 = scmp.ne.s32.totalorder %s4490_s16, %s3393_s18  ;;  %s3513_s27 = smov [#allocation15]  }
 0x654   : > { %s3397_s12 = sshll.u32 %s3513_s27, 4  ;;  %s3398_s12 = int_to_ptr.vmem [resolvable:$false] %s3397_s12 }
 0x655   : > { %p3395_p2 = pnand %p3394_p1, %p3728_p11  ;;  %s3399_s20 = scalar_lea.vmem %s3398_s12, 1024 }
 0x656   : > { %p3400_p10 = scmp.lt.s32.totalorder %s4490_s16, %s3398_s12  ;;  %p3401_p3 = scmp.lt.s32.totalorder %s3399_s20, %s3393_s18 }
 0x657   : > { %p3396_p0 = pneg %p3395_p2 }
 0x658   : > { %p3402_p12 = por %p3401_p3, %p3400_p10 }
 0x65a   : > { %p3403_p4 = pnand %p3402_p12, %p3396_p0 }
 0x65c   : > { %3406 = shalt.err (!%p3403_p4)
}
 0x65d   : > { %s3407_s19 = scalar_lea.hbm %s4466_s15, 512  ;;  %s3411_s13 = scalar_lea.hbm %s4571_s6, 1024 }
 0x65e   : > { %p3408_p9 = scmp.ne.s32.totalorder %s4466_s15, %s3407_s19  ;;  %p3412_p5 = scmp.lt.u32.totalorder %s4466_s15, %s4571_s6 }
 0x65f   : > { %p3413_p7 = scmp.lt.u32.totalorder %s3411_s13, %s3407_s19  ;;  %p3415_p1 = scmp.lt.u32.totalorder %s3407_s19, %s4466_s15 }
 0x660   : > { %p3409_p6 = pnand %p3408_p9, %p3728_p11 }
 0x661   : > { %p3414_p13 = por %p3413_p7, %p3412_p5 }
 0x662   : > { %p3410_p8 = pneg %p3409_p6 }
 0x663   : > { %p3416_p2 = por %p3415_p1, %p3414_p13 }
 0x665   : > { %p3417_p0 = pnand %p3416_p2, %p3410_p8 }
 0x667   : > { %3420 = shalt.err (!%p3417_p0)
}
 0x668   : > { %3007 = dma.vmem_to_hbm [thread:$0]  (%p3728_p11), %s4490_s16, 512, %s4466_s15, %s1978_s21, %s3510_s17, %s3510_s17, %s3511_s22  }
 0x669   : > { %s3421_s18 = scalar_lea.vmem %s2018_s11, 256  ;;  %p4941_p3 = scmp.eq.s32.totalorder %s3580_s9, 1 }
 0x66a   : > { %p3422_p10 = scmp.ne.s32.totalorder %s2018_s11, %s3421_s18  ;;  %p3428_p9 = scmp.lt.s32.totalorder %s2018_s11, %s2018_s11 }
 0x66b   : > { %p3429_p6 = scmp.lt.s32.totalorder %s3421_s18, %s3421_s18 }
 0x66c   : > { %p3423_p12 = pnand %p3422_p10, %p4941_p3 }
 0x66d   : > { %p3430_p8 = por %p3429_p6, %p3428_p9 }
 0x66e   : > { %p3424_p4 = pneg %p3423_p12 }
 0x670   : > { %p3431_p5 = pnand %p3430_p8, %p3424_p4 }
 0x672   : > { %3434 = shalt.err (!%p3431_p5)
}
 0x673   : > { %s3435_s25 = scalar_lea.hbm %s4573_s8, 256  ;;  %p4942_p7 = pmov %p4941_p3 }
 0x674   : > { %p3436_p11 = scmp.ne.s32.totalorder %s4573_s8, %s3435_s25  ;;  %p3441_p2 = scmp.lt.u32.totalorder %s3435_s25, %s4573_s8 }
 0x676   : > { %p3437_p13 = pnand %p3436_p11, %p4942_p7 }
 0x678   : > { %p3438_p1 = pneg %p3437_p13 }
 0x67a   : > { %p3443_p0 = pnand %p3441_p2, %p3438_p1 }
 0x67c   : > { %3446 = shalt.err (!%p3443_p0)
}
 0x67d   : > { %p4943_p10 = pmov %p4941_p3 }
 0x67f   : > { %3011 = dma.vmem_to_hbm [thread:$0]  (%p4943_p10), %s2018_s11, 256, %s4573_s8, [#allocation17], %s3510_s17, %s3510_s17, %s3511_s22  }
 0x680   : > { %3476 = dma.done.wait (%p4941_p3), [#allocation17], 512   ;;  %p4944_p12 = pmov %p4941_p3 }
 0x682   : > { %3478 = vsyncadd (%p4944_p12), [#allocation17], 4294966784 }
 0x683 PF: > { %s4945_s13 = sld [smem:[#allocation24_spill]]  ;;  %s4946_s27 = sld [smem:[#allocation25_spill]] }
 0x684   : > { %p4948_p9 = scmp.ge.s32.totalorder %s3497_s30, 2 }
 0x689   : > { %s2040_s12 = sand.u32 1, %s4945_s13   ;;  %p4947_p4 = scmp.ne.s32.totalorder %s4946_s27, 0 }
 0x68a   : > { %s2041_s18 = scalar_lea.sflag [#allocation8], %s2040_s12 }
 0x68b   : > { %p3035_p6 = pnand %p4948_p9, %p4947_p4 }
 0x68d   : > { %3480 = dma.done.wait (!%p3035_p6), %s2041_s18, 512  }
 0x68e   : > { %3482 = vsyncadd (!%p3035_p6), %s2041_s18, 4294966784  ;;  %p25_p8 = scmp.ge.s32.totalorder %s3715_s23, 4   ;;  %s4949_s27 = smov %s3489_s28 }
 0x68f   : > { %s4950_s28 = smov %s3493_s29  ;;  %s4951_s29 = smov %s3724_s10 }
 0x690   : > { %s4952_s30 = smov %s3715_s23  ;;  %27 = sbr.rel (!%p25_p8) target bundleno = 8 (0x8), region = 139 }
 0x697   :  { %2046 = vsyncpa [#allocation7], 1 }
 0x698   :  { %2048 = vsyncpa [#allocation7 + $0x1], 1 }
 0x699   :  { %2049 = vsyncpa [#allocation10], 1 }
 0x69a   :  { %2050 = vsyncpa [#allocation13], 1 }
 0x69b   :  { %2051 = vsyncpa [#allocation8], 1 }
 0x69c   :  { %2053 = vsyncpa [#allocation8 + $0x1], 1 }
 0x69d   :  { %2054 = vsyncpa [#allocation17], 1 }

</bundles_post_ra>
